<compile_context>
chip_gen: v6e
topology: v6e:2x2x1
jax: 0.10.0
libtpu: 0.0.40
codegen_flags: <defaults>
</compile_context>

<pallas_src>
import math
from functools import partial

import numpy as np
import jax
import jax.numpy as jnp
from jax import lax
from jax.scipy.special import erf
from jax.experimental import pallas as pl
from jax.experimental.pallas import tpu as pltpu

EPS_LN = 1e-5        # F.layer_norm default eps
EPS_L2 = 1e-12       # F.normalize default eps
_SQRT_2_OVER_PI = 0.7978845608028654


# ---------------------------------------------------------------------------
# In-kernel helpers (pure jnp, traced inside the Pallas kernel)
# ---------------------------------------------------------------------------
def _layernorm(x, gamma, eps=EPS_LN):
    mu = jnp.mean(x, axis=-1, keepdims=True)
    xc = x - mu
    var = jnp.mean(xc * xc, axis=-1, keepdims=True)
    return xc * lax.rsqrt(var + eps) * gamma            # beta buffer is zeros


def _l2norm(x):
    # F.normalize(x, dim=-1): x / max(||x||, eps) == x * rsqrt(max(ss, eps^2))
    ss = jnp.sum(x * x, axis=-1, keepdims=True)
    return x * lax.rsqrt(jnp.maximum(ss, EPS_L2 * EPS_L2))


def _gelu_tanh(x):
    # tanh-approx GELU (EUP slot instead of a long VALU erf polynomial).
    return 0.5 * x * (1.0 + jnp.tanh(_SQRT_2_OVER_PI * (x + 0.044715 * x * x * x)))


# ---------------------------------------------------------------------------
# Fused transformer-stack kernel. grid = (batch_tiles, depth); one step does
# one full layer (attention + GEGLU FF) for B_TILE batch elements.  The
# running activation is carried across the depth axis in acc_ref (f32).
# ---------------------------------------------------------------------------
def _stack_kernel(x_ref, ln_ref, sm_ref, wqkv_ref, wo_ref, w1_ref, g2_ref,
                  w2_ref, gfin_ref, o_ref, acc_ref,
                  *, b_tile, heads, dim_head, scale):
    bf16 = jnp.bfloat16
    d = pl.program_id(1)
    BT, H, dh = b_tile, heads, dim_head
    hd = H * dh
    N = x_ref.shape[1]
    D = x_ref.shape[2]

    # Layer 0: load this batch tile into the resident f32 accumulator,
    # flattened to (BT*N, D) so every dense matmul sees a tall M dimension.
    @pl.when(d == 0)
    def _():
        acc_ref[...] = x_ref[...].reshape(BT * N, D).astype(jnp.float32)

    x = acc_ref[...]                                      # (BT*N, D) f32

    # --------- unpack the packed per-layer small parameters ---------
    ln = ln_ref[0]                                        # (2, D) f32
    ga, g1 = ln[0:1, :], ln[1:2, :]                       # attn LN / ff LN1 gammas
    sm = sm_ref[0]                                        # (2 + 2H, 1, dh) f32
    qs = sm[0] * scale                                    # (1, dh): attention scale
    ks = sm[1]                                            #          folded into q
    nk = sm[2:2 + H]                                      # (H, 1, dh) null key
    nv = sm[2 + H:]                                       # (H, 1, dh) null value
    nkn = _l2norm(nk) * ks                                # normalized+scaled null key

    # ------------- Attention:  x <- to_out(attend(LN(x))) + x -------------
    xn = _layernorm(x, ga)
    qkv = jnp.dot(xn.astype(bf16), wqkv_ref[0],
                  preferred_element_type=jnp.float32)     # (BT*N, 3*hd) f32

    attn_rows = []
    for b in range(BT):                                   # small static unroll
        rows = qkv[b * N:(b + 1) * N]                     # (N, 3*hd)

        def hstack(c0):                                   # (N, 3hd) -> (H, N, dh)
            return jnp.stack([rows[:, c0 + h * dh: c0 + (h + 1) * dh]
                              for h in range(H)], axis=0)

        q, k, v = hstack(0), hstack(hd), hstack(2 * hd)

        # cosine-sim attention: l2norm then learned per-dim scales; the global
        # `scale` is folded into q so the (H, N, N) logits are never re-scaled.
        qn_f = _l2norm(q) * qs                            # (H, N, dh) f32
        qn = qn_f.astype(bf16)
        kn = (_l2norm(k) * ks).astype(bf16)

        sim = jnp.einsum('hqd,hkd->hqk', qn, kn,
                         preferred_element_type=jnp.float32)        # (H, N, N)
        # null-kv handled concat-free: separate logit column + value add.
        sim_null = jnp.sum(qn_f * nkn, axis=-1, keepdims=True)      # (H, N, 1)

        m = jnp.maximum(jnp.max(sim, axis=-1, keepdims=True), sim_null)
        p = jnp.exp(sim - m)                              # f32 exp (v5e-safe)
        p_null = jnp.exp(sim_null - m)
        denom = jnp.sum(p, axis=-1, keepdims=True) + p_null

        o = jnp.einsum('hqk,hkd->hqd', p.astype(bf16), v.astype(bf16),
                       preferred_element_type=jnp.float32)          # (H, N, dh)
        # deferred softmax division: divide the (N, dh) output, not (N, N) probs
        o = (o + p_null * nv) * pl.reciprocal(denom, approx=True)

        # out-projection: lane-concat heads -> ONE K = H*dh MXU matmul
        # (no (H, N, D) f32 intermediate, no cross-sublane head-sum).
        o_cat = jnp.concatenate([o[h] for h in range(H)], axis=-1)  # (N, hd)
        attn_rows.append(jnp.dot(o_cat.astype(bf16), wo_ref[0],
                                 preferred_element_type=jnp.float32))

    attn_out = attn_rows[0] if BT == 1 else jnp.concatenate(attn_rows, axis=0)
    x = x + attn_out                                      # residual (f32)

    # ------------- FeedForward (GEGLU):  x <- ff(x) + x -------------
    xn = _layernorm(x, g1)
    h12 = jnp.dot(xn.astype(bf16), w1_ref[0],
                  preferred_element_type=jnp.float32)     # (BT*N, 2*inner)
    inner = h12.shape[-1] // 2
    xh, gate = h12[:, :inner], h12[:, inner:]             # GEGLU chunk
    hff = gate * _gelu_tanh(xh)
    hn = _layernorm(hff, g2_ref[0])
    x = jnp.dot(hn.astype(bf16), w2_ref[0],
                preferred_element_type=jnp.float32) + x   # residual (f32)

    acc_ref[...] = x                                      # carry to layer d+1

    # Last layer: final LayerNorm, emit the lane-dense output tile.
    @pl.when(d == pl.num_programs(1) - 1)
    def _():
        y = _layernorm(x, gfin_ref[...])
        o_ref[...] = y.reshape(BT, N, D).astype(o_ref.dtype)


# ---------------------------------------------------------------------------
# Wrapper: single pallas_call over grid (batch_tiles, depth)
# ---------------------------------------------------------------------------
def self_transformer_blocks(x, params, *, heads, dim_head, scale=8.0, b_tile=None):
    B, N, D = x.shape
    depth = params["wqkv"].shape[0]
    assert params["wqkv"].shape[-1] == 3 * heads * dim_head
    assert N % 8 == 0 and D % 128 == 0

    if b_tile is None:
        # Largest divisor of B up to 8: amortizes per-layer weight DMA over the
        # tile.  For v7x megacore prefer leaving >= 2 parallel b-tiles when B
        # allows (trade-off vs. weight-streaming amortization).
        b_tile = 1
        for cand in range(min(B, 8), 0, -1):
            if B % cand == 0:
                b_tile = cand
                break
    assert B % b_tile == 0
    nb = B // b_tile

    def per_layer(arr):
        nz = arr.ndim - 1
        return pl.BlockSpec((1,) + arr.shape[1:],
                            lambda b, d, nz=nz: (d,) + (0,) * nz)

    kernel = partial(_stack_kernel, b_tile=b_tile, heads=heads,
                     dim_head=dim_head, scale=scale)
    return pl.pallas_call(
        kernel,
        out_shape=jax.ShapeDtypeStruct((B, N, D), x.dtype),
        grid=(nb, depth),
        in_specs=[
            pl.BlockSpec((b_tile, N, D), lambda b, d: (b, 0, 0)),  # x (DMA'd once per tile)
            per_layer(params["ln_d"]),      # packed attn-LN / ff-LN1 gammas
            per_layer(params["smalls"]),    # packed q/k scales + null k/v
            per_layer(params["wqkv"]),      # fused QKV weight
            per_layer(params["wo"]),        # out projection (hd, D)
            per_layer(params["w1"]),        # GEGLU Linear
            per_layer(params["ff_g2"]),
            per_layer(params["w2"]),
            pl.BlockSpec((1, D), lambda b, d: (0, 0)),             # final LN gamma
        ],
        out_specs=pl.BlockSpec((b_tile, N, D), lambda b, d: (b, 0, 0)),
        scratch_shapes=[pltpu.VMEM((b_tile * N, D), jnp.float32)],  # carried activation
        compiler_params=pltpu.CompilerParams(
            dimension_semantics=("parallel", "arbitrary"),
            # Keeps headroom on v7x (64 MiB physical); plenty on v5e/v6e.
            vmem_limit_bytes=64 * 1024 * 1024),
    )(x, params["ln_d"], params["smalls"], params["wqkv"], params["wo"],
      params["w1"], params["ff_g2"], params["w2"], params["norm_gamma"])


# ---------------------------------------------------------------------------
# Deterministic parameter init (shapes follow the module __init__; matmul
# weights stored bf16, LN gammas / scales / null-kv stay f32).  Small per-layer
# params are packed to cut kernel input count / per-step DMA descriptors.
# ---------------------------------------------------------------------------
def init_params(key, *, dim, depth, dim_head, heads, ff_mult):
    hd = heads * dim_head
    inner = int(dim * ff_mult * 2 / 3)
    assert inner % 128 == 0, "see TODO(synk): pad GEGLU inner dim to 128 multiple"
    ks = jax.random.split(key, 12)

    def w(k, shape, fan_in):
        return (jax.random.normal(k, shape, jnp.float32)
                / math.sqrt(fan_in)).astype(jnp.bfloat16)

    def g(k, shape):   # gamma / scale params near 1 (exercises the multiply)
        return 1.0 + 0.1 * jax.random.normal(k, shape, jnp.float32)

    attn_gamma = g(ks[0], (depth, 1, dim))
    ff_g1 = g(ks[1], (depth, 1, dim))
    q_scale = g(ks[2], (depth, 1, dim_head))
    k_scale = g(ks[3], (depth, 1, dim_head))
    null_k = jax.random.normal(ks[4], (depth, heads, dim_head), jnp.float32)
    null_v = jax.random.normal(ks[5], (depth, heads, dim_head), jnp.float32)

    return dict(
        ln_d=jnp.concatenate([attn_gamma, ff_g1], axis=1),          # (depth, 2, D)
        smalls=jnp.concatenate([q_scale, k_scale, null_k, null_v],
                               axis=1)[:, :, None, :],              # (depth, 2+2H, 1, dh)
        wqkv=w(ks[6], (depth, dim, 3 * hd), dim),                   # [to_q | to_kv(k,v)]
        wo=w(ks[7], (depth, hd, dim), hd),                          # concat-head out proj
        w1=w(ks[8], (depth, dim, 2 * inner), dim),                  # GEGLU [x | gate]
        ff_g2=g(ks[9], (depth, 1, inner)),
        w2=w(ks[10], (depth, inner, dim), inner),
        norm_gamma=g(ks[11], (1, dim)),
    )


# ---------------------------------------------------------------------------
# Pure-JAX reference mirroring the PyTorch forward.  Same bf16 matmul-operand
# precision (f32 accumulation) as the kernel; LN / softmax / residuals f32;
# GELU is the exact erf form.
# ---------------------------------------------------------------------------
def ref_forward(x, p, *, heads, dim_head, scale=8.0):
    bf = jnp.bfloat16

    def ln(t, g):
        mu = jnp.mean(t, axis=-1, keepdims=True)
        tc = t - mu
        var = jnp.mean(tc * tc, axis=-1, keepdims=True)
        return tc / jnp.sqrt(var + EPS_LN) * g

    def mm(a, w):
        return jnp.dot(a.astype(bf), w.astype(bf), preferred_element_type=jnp.float32)

    B, N, D = x.shape
    H, dh = heads, dim_head
    hd = H * dh
    depth = p["wqkv"].shape[0]
    x = x.astype(jnp.float32)

    for l in range(depth):
        ga, g1 = p["ln_d"][l, 0], p["ln_d"][l, 1]
        sm = p["smalls"][l]                         # (2+2H, 1, dh)
        q_scale, k_scale = sm[0, 0], sm[1, 0]
        null_k, null_v = sm[2:2 + H], sm[2 + H:]    # (H, 1, dh)

        xn = ln(x, ga)
        qkv = mm(xn, p["wqkv"][l])
        q = qkv[..., :hd].reshape(B, N, H, dh).transpose(0, 2, 1, 3)
        k = qkv[..., hd:2 * hd].reshape(B, N, H, dh).transpose(0, 2, 1, 3)
        v = qkv[..., 2 * hd:].reshape(B, N, H, dh).transpose(0, 2, 1, 3)
        nk = jnp.broadcast_to(null_k[None], (B, H, 1, dh))
        nv = jnp.broadcast_to(null_v[None], (B, H, 1, dh))
        k = jnp.concatenate([nk, k], axis=2)
        v = jnp.concatenate([nv, v], axis=2)
        q = q / jnp.maximum(jnp.linalg.norm(q, axis=-1, keepdims=True), EPS_L2) * q_scale
        k = k / jnp.maximum(jnp.linalg.norm(k, axis=-1, keepdims=True), EPS_L2) * k_scale
        sim = scale * jnp.einsum("bhid,bhjd->bhij", q.astype(bf), k.astype(bf),
                                 preferred_element_type=jnp.float32)
        attn = jax.nn.softmax(sim, axis=-1)
        o = jnp.einsum("bhij,bhjd->bhid", attn.astype(bf), v.astype(bf),
                       preferred_element_type=jnp.float32)
        o = o.transpose(0, 2, 1, 3).reshape(B, N, hd)
        x = mm(o, p["wo"][l]) + x

        xn = ln(x, g1)
        h12 = mm(xn, p["w1"][l])
        inner = h12.shape[-1] // 2
        xh, gate = h12[..., :inner], h12[..., inner:]
        hff = gate * (0.5 * xh * (1.0 + erf(xh / math.sqrt(2.0))))  # exact GELU
        x = mm(ln(hff, p["ff_g2"][l]), p["w2"][l]) + x

    return ln(x, p["norm_gamma"])


if __name__ == "__main__":
    # Small, lane/sublane-aligned test shapes (dim_head matches the module default).
    B, N, D = 2, 16, 128
    heads, dim_head = 2, 64
    depth, ff_mult = 2, 3          # GEGLU inner dim = int(D * ff_mult * 2 / 3) = 256

    key = jax.random.PRNGKey(0)
    kx, kp = jax.random.split(key)
    x = jax.random.normal(kx, (B, N, D), jnp.float32)
    params = init_params(kp, dim=D, depth=depth, dim_head=dim_head,
                         heads=heads, ff_mult=ff_mult)

    fwd = jax.jit(partial(self_transformer_blocks, heads=heads, dim_head=dim_head))
    out = fwd(x, params)
    jax.block_until_ready(out)

    ref = ref_forward(x, params, heads=heads, dim_head=dim_head)
    # Remaining kernel-vs-ref differences: tanh-GELU vs exact erf-GELU, approx
    # EUP reciprocal + deferred softmax division, bf16 rounding order.
    np.testing.assert_allclose(np.asarray(out), np.asarray(ref),
                               atol=2e-2, rtol=2e-2)
    print("KERNEL_OK")
</pallas_src>

<mosaic_0001>
module attributes {stable_mosaic.version = 11 : i64} {
  func.func @_stack_kernel(%arg0: i32, %arg1: i32, %arg2: memref<2x16x128xf32, #tpu.memory_space<vmem>>, %arg3: memref<1x2x128xf32, #tpu.memory_space<vmem>>, %arg4: memref<1x6x1x64xf32, #tpu.memory_space<vmem>>, %arg5: memref<1x128x384xbf16, #tpu.memory_space<vmem>>, %arg6: memref<1x128x128xbf16, #tpu.memory_space<vmem>>, %arg7: memref<1x128x512xbf16, #tpu.memory_space<vmem>>, %arg8: memref<1x1x256xf32, #tpu.memory_space<vmem>>, %arg9: memref<1x256x128xbf16, #tpu.memory_space<vmem>>, %arg10: memref<1x128xf32, #tpu.memory_space<vmem>>, %arg11: memref<2x16x128xf32, #tpu.memory_space<vmem>>, %arg12: memref<32x128xf32, #tpu.memory_space<vmem>>) attributes {dimension_semantics = [#tpu.dimension_semantics<parallel>, #tpu.dimension_semantics<arbitrary>], iteration_bounds = array<i64: 1, 2>, scalar_prefetch = 0 : i64, scratch_operands = 1 : i64, tpu.core_type = #tpu.core_type<tc>, window_params = [{transform_indices = @transform_0, window_bounds = array<i64: 2, 16, 128>}, {transform_indices = @transform_1, window_bounds = array<i64: 1, 2, 128>}, {transform_indices = @transform_2, window_bounds = array<i64: 1, 6, 1, 64>}, {transform_indices = @transform_3, window_bounds = array<i64: 1, 128, 384>}, {transform_indices = @transform_4, window_bounds = array<i64: 1, 128, 128>}, {transform_indices = @transform_5, window_bounds = array<i64: 1, 128, 512>}, {transform_indices = @transform_6, window_bounds = array<i64: 1, 1, 256>}, {transform_indices = @transform_7, window_bounds = array<i64: 1, 256, 128>}, {pipeline_mode = #tpu.pipeline_mode<synchronous>, transform_indices = @transform_8, window_bounds = array<i64: 1, 128>}, {transform_indices = @transform_9, window_bounds = array<i64: 2, 16, 128>}]} {
    %c0_i32 = arith.constant 0 : i32
    %0 = arith.cmpi eq, %arg1, %c0_i32 : i32
    %1 = arith.extui %0 : i1 to i32
    %c0_i32_0 = arith.constant 0 : i32
    %2 = arith.cmpi ne, %1, %c0_i32_0 : i32
    scf.if %2 {
      %c0_74 = arith.constant 0 : index
      %c0_75 = arith.constant 0 : index
      %c0_76 = arith.constant 0 : index
      %270 = vector.load %arg2[%c0_74, %c0_75, %c0_76] : memref<2x16x128xf32, #tpu.memory_space<vmem>>, vector<2x16x128xf32>
      %271 = vector.shape_cast %270 : vector<2x16x128xf32> to vector<32x128xf32>
      %c0_77 = arith.constant 0 : index
      %c0_78 = arith.constant 0 : index
      %272 = vector.load %arg12[%c0_77, %c0_78] : memref<32x128xf32, #tpu.memory_space<vmem>>, vector<32x128xf32>
      tpu.vector_store %arg12[%c0_77, %c0_78], %271 {strides = array<i32>} : memref<32x128xf32, #tpu.memory_space<vmem>>, vector<32x128xf32>,
    } else {
    }
    %c0 = arith.constant 0 : index
    %c0_1 = arith.constant 0 : index
    %3 = vector.load %arg12[%c0, %c0_1] : memref<32x128xf32, #tpu.memory_space<vmem>>, vector<32x128xf32>
    %c0_2 = arith.constant 0 : index
    %c0_3 = arith.constant 0 : index
    %c0_4 = arith.constant 0 : index
    %4 = vector.load %arg3[%c0_2, %c0_3, %c0_4] : memref<1x2x128xf32, #tpu.memory_space<vmem>>, vector<1x2x128xf32>
    %5 = vector.shape_cast %4 : vector<1x2x128xf32> to vector<2x128xf32>
    %6 = vector.extract_strided_slice %5 {offsets = [0, 0], sizes = [1, 128], strides = [1, 1]} : vector<2x128xf32> to vector<1x128xf32>
    %7 = vector.extract_strided_slice %5 {offsets = [1, 0], sizes = [1, 128], strides = [1, 1]} : vector<2x128xf32> to vector<1x128xf32>
    %c0_5 = arith.constant 0 : index
    %c0_6 = arith.constant 0 : index
    %c0_7 = arith.constant 0 : index
    %c0_8 = arith.constant 0 : index
    %8 = vector.load %arg4[%c0_5, %c0_6, %c0_7, %c0_8] : memref<1x6x1x64xf32, #tpu.memory_space<vmem>>, vector<1x6x1x64xf32>
    %9 = vector.shape_cast %8 : vector<1x6x1x64xf32> to vector<6x1x64xf32>
    %10 = vector.extract_strided_slice %9 {offsets = [0, 0, 0], sizes = [1, 1, 64], strides = [1, 1, 1]} : vector<6x1x64xf32> to vector<1x1x64xf32>
    %11 = vector.shape_cast %10 : vector<1x1x64xf32> to vector<1x64xf32>
    %cst = arith.constant 8.000000e+00 : f32
    %12 = vector.broadcast %cst : f32 to vector<1x64xf32>
    %13 = arith.mulf %11, %12 : vector<1x64xf32>
    %14 = vector.extract_strided_slice %9 {offsets = [1, 0, 0], sizes = [1, 1, 64], strides = [1, 1, 1]} : vector<6x1x64xf32> to vector<1x1x64xf32>
    %15 = vector.shape_cast %14 : vector<1x1x64xf32> to vector<1x64xf32>
    %16 = vector.extract_strided_slice %9 {offsets = [2, 0, 0], sizes = [2, 1, 64], strides = [1, 1, 1]} : vector<6x1x64xf32> to vector<2x1x64xf32>
    %17 = vector.extract_strided_slice %9 {offsets = [4, 0, 0], sizes = [2, 1, 64], strides = [1, 1, 1]} : vector<6x1x64xf32> to vector<2x1x64xf32>
    %18 = arith.mulf %16, %16 : vector<2x1x64xf32>
    %cst_9 = arith.constant dense<0.000000e+00> : vector<2x1xf32>
    %19 = vector.multi_reduction <add>, %18, %cst_9 [2] : vector<2x1x64xf32> to vector<2x1xf32>
    %20 = vector.shape_cast %19 : vector<2x1xf32> to vector<2x1x1xf32>
    %cst_10 = arith.constant 1.000000e-24 : f32
    %21 = vector.broadcast %cst_10 : f32 to vector<2x1x1xf32>
    %22 = arith.maximumf %20, %21 : vector<2x1x1xf32>
    %23 = math.rsqrt %22 : vector<2x1x1xf32>
    %24 = vector.broadcast %23 : vector<2x1x1xf32> to vector<2x1x64xf32>
    %25 = arith.mulf %16, %24 : vector<2x1x64xf32>
    %26 = vector.shape_cast %15 : vector<1x64xf32> to vector<1x1x64xf32>
    %27 = vector.broadcast %26 : vector<1x1x64xf32> to vector<2x1x64xf32>
    %28 = arith.mulf %25, %27 : vector<2x1x64xf32>
    %cst_11 = arith.constant dense<0.000000e+00> : vector<32xf32>
    %29 = vector.multi_reduction <add>, %3, %cst_11 [1] : vector<32x128xf32> to vector<32xf32>
    %30 = vector.shape_cast %29 : vector<32xf32> to vector<32x1xf32>
    %cst_12 = arith.constant 1.280000e+02 : f32
    %31 = vector.broadcast %cst_12 : f32 to vector<32x1xf32>
    %32 = arith.divf %30, %31 : vector<32x1xf32>
    %33 = vector.broadcast %32 : vector<32x1xf32> to vector<32x128xf32>
    %34 = arith.subf %3, %33 : vector<32x128xf32>
    %35 = arith.mulf %34, %34 : vector<32x128xf32>
    %cst_13 = arith.constant dense<0.000000e+00> : vector<32xf32>
    %36 = vector.multi_reduction <add>, %35, %cst_13 [1] : vector<32x128xf32> to vector<32xf32>
    %37 = vector.shape_cast %36 : vector<32xf32> to vector<32x1xf32>
    %cst_14 = arith.constant 1.280000e+02 : f32
    %38 = vector.broadcast %cst_14 : f32 to vector<32x1xf32>
    %39 = arith.divf %37, %38 : vector<32x1xf32>
    %cst_15 = arith.constant 9.99999974E-6 : f32
    %40 = vector.broadcast %cst_15 : f32 to vector<32x1xf32>
    %41 = arith.addf %39, %40 : vector<32x1xf32>
    %42 = math.rsqrt %41 : vector<32x1xf32>
    %43 = vector.broadcast %42 : vector<32x1xf32> to vector<32x128xf32>
    %44 = arith.mulf %34, %43 : vector<32x128xf32>
    %45 = vector.broadcast %6 : vector<1x128xf32> to vector<32x128xf32>
    %46 = arith.mulf %44, %45 : vector<32x128xf32>
    %47 = arith.truncf %46 : vector<32x128xf32> to vector<32x128xbf16>
    %c0_16 = arith.constant 0 : index
    %c0_17 = arith.constant 0 : index
    %c0_18 = arith.constant 0 : index
    %48 = vector.load %arg5[%c0_16, %c0_17, %c0_18] : memref<1x128x384xbf16, #tpu.memory_space<vmem>>, vector<1x128x384xbf16>
    %49 = vector.shape_cast %48 : vector<1x128x384xbf16> to vector<128x384xbf16>
    %cst_19 = arith.constant dense<0.000000e+00> : vector<32x384xf32>
    %50 = tpu.matmul %47, %49, %cst_19 {dimension_numbers = #tpu.dot_dimension_numbers<[1], [0], [0], [1], [0, 0, 1, 1], [], []>} : vector<32x128xbf16>, vector<128x384xbf16>, vector<32x384xf32> -> vector<32x384xf32>
    %51 = vector.extract_strided_slice %50 {offsets = [0, 0], sizes = [16, 384], strides = [1, 1]} : vector<32x384xf32> to vector<16x384xf32>
    %52 = vector.extract_strided_slice %51 {offsets = [0, 0], sizes = [16, 64], strides = [1, 1]} : vector<16x384xf32> to vector<16x64xf32>
    %53 = vector.extract_strided_slice %51 {offsets = [0, 64], sizes = [16, 64], strides = [1, 1]} : vector<16x384xf32> to vector<16x64xf32>
    %54 = vector.shape_cast %52 : vector<16x64xf32> to vector<1x16x64xf32>
    %55 = vector.shape_cast %53 : vector<16x64xf32> to vector<1x16x64xf32>
    %56 = tpu.concatenate %54, %55 in 0 : vector<1x16x64xf32>, vector<1x16x64xf32> -> vector<2x16x64xf32>
    %57 = vector.extract_strided_slice %51 {offsets = [0, 128], sizes = [16, 64], strides = [1, 1]} : vector<16x384xf32> to vector<16x64xf32>
    %58 = vector.extract_strided_slice %51 {offsets = [0, 192], sizes = [16, 64], strides = [1, 1]} : vector<16x384xf32> to vector<16x64xf32>
    %59 = vector.shape_cast %57 : vector<16x64xf32> to vector<1x16x64xf32>
    %60 = vector.shape_cast %58 : vector<16x64xf32> to vector<1x16x64xf32>
    %61 = tpu.concatenate %59, %60 in 0 : vector<1x16x64xf32>, vector<1x16x64xf32> -> vector<2x16x64xf32>
    %62 = vector.extract_strided_slice %51 {offsets = [0, 256], sizes = [16, 64], strides = [1, 1]} : vector<16x384xf32> to vector<16x64xf32>
    %63 = vector.extract_strided_slice %51 {offsets = [0, 320], sizes = [16, 64], strides = [1, 1]} : vector<16x384xf32> to vector<16x64xf32>
    %64 = vector.shape_cast %62 : vector<16x64xf32> to vector<1x16x64xf32>
    %65 = vector.shape_cast %63 : vector<16x64xf32> to vector<1x16x64xf32>
    %66 = tpu.concatenate %64, %65 in 0 : vector<1x16x64xf32>, vector<1x16x64xf32> -> vector<2x16x64xf32>
    %67 = arith.mulf %56, %56 : vector<2x16x64xf32>
    %cst_20 = arith.constant dense<0.000000e+00> : vector<2x16xf32>
    %68 = vector.multi_reduction <add>, %67, %cst_20 [2] : vector<2x16x64xf32> to vector<2x16xf32>
    %69 = vector.shape_cast %68 : vector<2x16xf32> to vector<2x16x1xf32>
    %cst_21 = arith.constant 1.000000e-24 : f32
    %70 = vector.broadcast %cst_21 : f32 to vector<2x16x1xf32>
    %71 = arith.maximumf %69, %70 : vector<2x16x1xf32>
    %72 = math.rsqrt %71 : vector<2x16x1xf32>
    %73 = vector.broadcast %72 : vector<2x16x1xf32> to vector<2x16x64xf32>
    %74 = arith.mulf %56, %73 : vector<2x16x64xf32>
    %75 = vector.shape_cast %13 : vector<1x64xf32> to vector<1x1x64xf32>
    %76 = vector.broadcast %75 : vector<1x1x64xf32> to vector<2x16x64xf32>
    %77 = arith.mulf %74, %76 : vector<2x16x64xf32>
    %78 = arith.truncf %77 : vector<2x16x64xf32> to vector<2x16x64xbf16>
    %79 = arith.mulf %61, %61 : vector<2x16x64xf32>
    %cst_22 = arith.constant dense<0.000000e+00> : vector<2x16xf32>
    %80 = vector.multi_reduction <add>, %79, %cst_22 [2] : vector<2x16x64xf32> to vector<2x16xf32>
    %81 = vector.shape_cast %80 : vector<2x16xf32> to vector<2x16x1xf32>
    %cst_23 = arith.constant 1.000000e-24 : f32
    %82 = vector.broadcast %cst_23 : f32 to vector<2x16x1xf32>
    %83 = arith.maximumf %81, %82 : vector<2x16x1xf32>
    %84 = math.rsqrt %83 : vector<2x16x1xf32>
    %85 = vector.broadcast %84 : vector<2x16x1xf32> to vector<2x16x64xf32>
    %86 = arith.mulf %61, %85 : vector<2x16x64xf32>
    %87 = vector.shape_cast %15 : vector<1x64xf32> to vector<1x1x64xf32>
    %88 = vector.broadcast %87 : vector<1x1x64xf32> to vector<2x16x64xf32>
    %89 = arith.mulf %86, %88 : vector<2x16x64xf32>
    %90 = arith.truncf %89 : vector<2x16x64xf32> to vector<2x16x64xbf16>
    "tpu.trace_start"() <{level = 10 : i32, message = "hqd,hkd->hqk"}> : () -> ()
    %cst_24 = arith.constant dense<0.000000e+00> : vector<2x16x16xf32>
    %91 = tpu.matmul %78, %90, %cst_24 {dimension_numbers = #tpu.dot_dimension_numbers<[2], [2], [1], [1], [0, 0, 0, 1, 1, 1], [0], [0]>} : vector<2x16x64xbf16>, vector<2x16x64xbf16>, vector<2x16x16xf32> -> vector<2x16x16xf32>
    "tpu.trace_stop"() : () -> ()
    %92 = vector.broadcast %28 : vector<2x1x64xf32> to vector<2x16x64xf32>
    %93 = arith.mulf %77, %92 : vector<2x16x64xf32>
    %cst_25 = arith.constant dense<0.000000e+00> : vector<2x16xf32>
    %94 = vector.multi_reduction <add>, %93, %cst_25 [2] : vector<2x16x64xf32> to vector<2x16xf32>
    %95 = vector.shape_cast %94 : vector<2x16xf32> to vector<2x16x1xf32>
    %cst_26 = arith.constant dense<0xFF800000> : vector<2x16xf32>
    %96 = vector.multi_reduction <maximumf>, %91, %cst_26 [2] : vector<2x16x16xf32> to vector<2x16xf32>
    %97 = vector.shape_cast %96 : vector<2x16xf32> to vector<2x16x1xf32>
    %98 = arith.maximumf %97, %95 : vector<2x16x1xf32>
    %99 = vector.broadcast %98 : vector<2x16x1xf32> to vector<2x16x16xf32>
    %100 = arith.subf %91, %99 : vector<2x16x16xf32>
    %101 = math.exp %100 : vector<2x16x16xf32>
    %102 = arith.subf %95, %98 : vector<2x16x1xf32>
    %103 = math.exp %102 : vector<2x16x1xf32>
    %cst_27 = arith.constant dense<0.000000e+00> : vector<2x16xf32>
    %104 = vector.multi_reduction <add>, %101, %cst_27 [2] : vector<2x16x16xf32> to vector<2x16xf32>
    %105 = vector.shape_cast %104 : vector<2x16xf32> to vector<2x16x1xf32>
    %106 = arith.addf %105, %103 : vector<2x16x1xf32>
    %107 = arith.truncf %101 : vector<2x16x16xf32> to vector<2x16x16xbf16>
    %108 = arith.truncf %66 : vector<2x16x64xf32> to vector<2x16x64xbf16>
    "tpu.trace_start"() <{level = 10 : i32, message = "hqk,hkd->hqd"}> : () -> ()
    %cst_28 = arith.constant dense<0.000000e+00> : vector<2x16x64xf32>
    %109 = tpu.matmul %107, %108, %cst_28 {dimension_numbers = #tpu.dot_dimension_numbers<[2], [1], [1], [2], [0, 0, 0, 1, 1, 2], [0], [0]>} : vector<2x16x16xbf16>, vector<2x16x64xbf16>, vector<2x16x64xf32> -> vector<2x16x64xf32>
    "tpu.trace_stop"() : () -> ()
    %110 = vector.broadcast %103 : vector<2x16x1xf32> to vector<2x16x64xf32>
    %111 = vector.broadcast %17 : vector<2x1x64xf32> to vector<2x16x64xf32>
    %112 = arith.mulf %110, %111 : vector<2x16x64xf32>
    %113 = arith.addf %109, %112 : vector<2x16x64xf32>
    %114 = tpu.reciprocal %106 {approx = true} : vector<2x16x1xf32> -> vector<2x16x1xf32>
    %115 = vector.broadcast %114 : vector<2x16x1xf32> to vector<2x16x64xf32>
    %116 = arith.mulf %113, %115 : vector<2x16x64xf32>
    %117 = vector.extract_strided_slice %116 {offsets = [0, 0, 0], sizes = [1, 16, 64], strides = [1, 1, 1]} : vector<2x16x64xf32> to vector<1x16x64xf32>
    %118 = vector.shape_cast %117 : vector<1x16x64xf32> to vector<16x64xf32>
    %119 = vector.extract_strided_slice %116 {offsets = [1, 0, 0], sizes = [1, 16, 64], strides = [1, 1, 1]} : vector<2x16x64xf32> to vector<1x16x64xf32>
    %120 = vector.shape_cast %119 : vector<1x16x64xf32> to vector<16x64xf32>
    %121 = tpu.concatenate %118, %120 in 1 : vector<16x64xf32>, vector<16x64xf32> -> vector<16x128xf32>
    %122 = arith.truncf %121 : vector<16x128xf32> to vector<16x128xbf16>
    %c0_29 = arith.constant 0 : index
    %c0_30 = arith.constant 0 : index
    %c0_31 = arith.constant 0 : index
    %123 = vector.load %arg6[%c0_29, %c0_30, %c0_31] : memref<1x128x128xbf16, #tpu.memory_space<vmem>>, vector<1x128x128xbf16>
    %124 = vector.shape_cast %123 : vector<1x128x128xbf16> to vector<128x128xbf16>
    %cst_32 = arith.constant dense<0.000000e+00> : vector<16x128xf32>
    %125 = tpu.matmul %122, %124, %cst_32 {dimension_numbers = #tpu.dot_dimension_numbers<[1], [0], [0], [1], [0, 0, 1, 1], [], []>} : vector<16x128xbf16>, vector<128x128xbf16>, vector<16x128xf32> -> vector<16x128xf32>
    %126 = vector.extract_strided_slice %50 {offsets = [16, 0], sizes = [16, 384], strides = [1, 1]} : vector<32x384xf32> to vector<16x384xf32>
    %127 = vector.extract_strided_slice %126 {offsets = [0, 0], sizes = [16, 64], strides = [1, 1]} : vector<16x384xf32> to vector<16x64xf32>
    %128 = vector.extract_strided_slice %126 {offsets = [0, 64], sizes = [16, 64], strides = [1, 1]} : vector<16x384xf32> to vector<16x64xf32>
    %129 = vector.shape_cast %127 : vector<16x64xf32> to vector<1x16x64xf32>
    %130 = vector.shape_cast %128 : vector<16x64xf32> to vector<1x16x64xf32>
    %131 = tpu.concatenate %129, %130 in 0 : vector<1x16x64xf32>, vector<1x16x64xf32> -> vector<2x16x64xf32>
    %132 = vector.extract_strided_slice %126 {offsets = [0, 128], sizes = [16, 64], strides = [1, 1]} : vector<16x384xf32> to vector<16x64xf32>
    %133 = vector.extract_strided_slice %126 {offsets = [0, 192], sizes = [16, 64], strides = [1, 1]} : vector<16x384xf32> to vector<16x64xf32>
    %134 = vector.shape_cast %132 : vector<16x64xf32> to vector<1x16x64xf32>
    %135 = vector.shape_cast %133 : vector<16x64xf32> to vector<1x16x64xf32>
    %136 = tpu.concatenate %134, %135 in 0 : vector<1x16x64xf32>, vector<1x16x64xf32> -> vector<2x16x64xf32>
    %137 = vector.extract_strided_slice %126 {offsets = [0, 256], sizes = [16, 64], strides = [1, 1]} : vector<16x384xf32> to vector<16x64xf32>
    %138 = vector.extract_strided_slice %126 {offsets = [0, 320], sizes = [16, 64], strides = [1, 1]} : vector<16x384xf32> to vector<16x64xf32>
    %139 = vector.shape_cast %137 : vector<16x64xf32> to vector<1x16x64xf32>
    %140 = vector.shape_cast %138 : vector<16x64xf32> to vector<1x16x64xf32>
    %141 = tpu.concatenate %139, %140 in 0 : vector<1x16x64xf32>, vector<1x16x64xf32> -> vector<2x16x64xf32>
    %142 = arith.mulf %131, %131 : vector<2x16x64xf32>
    %cst_33 = arith.constant dense<0.000000e+00> : vector<2x16xf32>
    %143 = vector.multi_reduction <add>, %142, %cst_33 [2] : vector<2x16x64xf32> to vector<2x16xf32>
    %144 = vector.shape_cast %143 : vector<2x16xf32> to vector<2x16x1xf32>
    %cst_34 = arith.constant 1.000000e-24 : f32
    %145 = vector.broadcast %cst_34 : f32 to vector<2x16x1xf32>
    %146 = arith.maximumf %144, %145 : vector<2x16x1xf32>
    %147 = math.rsqrt %146 : vector<2x16x1xf32>
    %148 = vector.broadcast %147 : vector<2x16x1xf32> to vector<2x16x64xf32>
    %149 = arith.mulf %131, %148 : vector<2x16x64xf32>
    %150 = vector.shape_cast %13 : vector<1x64xf32> to vector<1x1x64xf32>
    %151 = vector.broadcast %150 : vector<1x1x64xf32> to vector<2x16x64xf32>
    %152 = arith.mulf %149, %151 : vector<2x16x64xf32>
    %153 = arith.truncf %152 : vector<2x16x64xf32> to vector<2x16x64xbf16>
    %154 = arith.mulf %136, %136 : vector<2x16x64xf32>
    %cst_35 = arith.constant dense<0.000000e+00> : vector<2x16xf32>
    %155 = vector.multi_reduction <add>, %154, %cst_35 [2] : vector<2x16x64xf32> to vector<2x16xf32>
    %156 = vector.shape_cast %155 : vector<2x16xf32> to vector<2x16x1xf32>
    %cst_36 = arith.constant 1.000000e-24 : f32
    %157 = vector.broadcast %cst_36 : f32 to vector<2x16x1xf32>
    %158 = arith.maximumf %156, %157 : vector<2x16x1xf32>
    %159 = math.rsqrt %158 : vector<2x16x1xf32>
    %160 = vector.broadcast %159 : vector<2x16x1xf32> to vector<2x16x64xf32>
    %161 = arith.mulf %136, %160 : vector<2x16x64xf32>
    %162 = vector.shape_cast %15 : vector<1x64xf32> to vector<1x1x64xf32>
    %163 = vector.broadcast %162 : vector<1x1x64xf32> to vector<2x16x64xf32>
    %164 = arith.mulf %161, %163 : vector<2x16x64xf32>
    %165 = arith.truncf %164 : vector<2x16x64xf32> to vector<2x16x64xbf16>
    "tpu.trace_start"() <{level = 10 : i32, message = "hqd,hkd->hqk"}> : () -> ()
    %cst_37 = arith.constant dense<0.000000e+00> : vector<2x16x16xf32>
    %166 = tpu.matmul %153, %165, %cst_37 {dimension_numbers = #tpu.dot_dimension_numbers<[2], [2], [1], [1], [0, 0, 0, 1, 1, 1], [0], [0]>} : vector<2x16x64xbf16>, vector<2x16x64xbf16>, vector<2x16x16xf32> -> vector<2x16x16xf32>
    "tpu.trace_stop"() : () -> ()
    %167 = vector.broadcast %28 : vector<2x1x64xf32> to vector<2x16x64xf32>
    %168 = arith.mulf %152, %167 : vector<2x16x64xf32>
    %cst_38 = arith.constant dense<0.000000e+00> : vector<2x16xf32>
    %169 = vector.multi_reduction <add>, %168, %cst_38 [2] : vector<2x16x64xf32> to vector<2x16xf32>
    %170 = vector.shape_cast %169 : vector<2x16xf32> to vector<2x16x1xf32>
    %cst_39 = arith.constant dense<0xFF800000> : vector<2x16xf32>
    %171 = vector.multi_reduction <maximumf>, %166, %cst_39 [2] : vector<2x16x16xf32> to vector<2x16xf32>
    %172 = vector.shape_cast %171 : vector<2x16xf32> to vector<2x16x1xf32>
    %173 = arith.maximumf %172, %170 : vector<2x16x1xf32>
    %174 = vector.broadcast %173 : vector<2x16x1xf32> to vector<2x16x16xf32>
    %175 = arith.subf %166, %174 : vector<2x16x16xf32>
    %176 = math.exp %175 : vector<2x16x16xf32>
    %177 = arith.subf %170, %173 : vector<2x16x1xf32>
    %178 = math.exp %177 : vector<2x16x1xf32>
    %cst_40 = arith.constant dense<0.000000e+00> : vector<2x16xf32>
    %179 = vector.multi_reduction <add>, %176, %cst_40 [2] : vector<2x16x16xf32> to vector<2x16xf32>
    %180 = vector.shape_cast %179 : vector<2x16xf32> to vector<2x16x1xf32>
    %181 = arith.addf %180, %178 : vector<2x16x1xf32>
    %182 = arith.truncf %176 : vector<2x16x16xf32> to vector<2x16x16xbf16>
    %183 = arith.truncf %141 : vector<2x16x64xf32> to vector<2x16x64xbf16>
    "tpu.trace_start"() <{level = 10 : i32, message = "hqk,hkd->hqd"}> : () -> ()
    %cst_41 = arith.constant dense<0.000000e+00> : vector<2x16x64xf32>
    %184 = tpu.matmul %182, %183, %cst_41 {dimension_numbers = #tpu.dot_dimension_numbers<[2], [1], [1], [2], [0, 0, 0, 1, 1, 2], [0], [0]>} : vector<2x16x16xbf16>, vector<2x16x64xbf16>, vector<2x16x64xf32> -> vector<2x16x64xf32>
    "tpu.trace_stop"() : () -> ()
    %185 = vector.broadcast %178 : vector<2x16x1xf32> to vector<2x16x64xf32>
    %186 = vector.broadcast %17 : vector<2x1x64xf32> to vector<2x16x64xf32>
    %187 = arith.mulf %185, %186 : vector<2x16x64xf32>
    %188 = arith.addf %184, %187 : vector<2x16x64xf32>
    %189 = tpu.reciprocal %181 {approx = true} : vector<2x16x1xf32> -> vector<2x16x1xf32>
    %190 = vector.broadcast %189 : vector<2x16x1xf32> to vector<2x16x64xf32>
    %191 = arith.mulf %188, %190 : vector<2x16x64xf32>
    %192 = vector.extract_strided_slice %191 {offsets = [0, 0, 0], sizes = [1, 16, 64], strides = [1, 1, 1]} : vector<2x16x64xf32> to vector<1x16x64xf32>
    %193 = vector.shape_cast %192 : vector<1x16x64xf32> to vector<16x64xf32>
    %194 = vector.extract_strided_slice %191 {offsets = [1, 0, 0], sizes = [1, 16, 64], strides = [1, 1, 1]} : vector<2x16x64xf32> to vector<1x16x64xf32>
    %195 = vector.shape_cast %194 : vector<1x16x64xf32> to vector<16x64xf32>
    %196 = tpu.concatenate %193, %195 in 1 : vector<16x64xf32>, vector<16x64xf32> -> vector<16x128xf32>
    %197 = arith.truncf %196 : vector<16x128xf32> to vector<16x128xbf16>
    %c0_42 = arith.constant 0 : index
    %c0_43 = arith.constant 0 : index
    %c0_44 = arith.constant 0 : index
    %198 = vector.load %arg6[%c0_42, %c0_43, %c0_44] : memref<1x128x128xbf16, #tpu.memory_space<vmem>>, vector<1x128x128xbf16>
    %199 = vector.shape_cast %198 : vector<1x128x128xbf16> to vector<128x128xbf16>
    %cst_45 = arith.constant dense<0.000000e+00> : vector<16x128xf32>
    %200 = tpu.matmul %197, %199, %cst_45 {dimension_numbers = #tpu.dot_dimension_numbers<[1], [0], [0], [1], [0, 0, 1, 1], [], []>} : vector<16x128xbf16>, vector<128x128xbf16>, vector<16x128xf32> -> vector<16x128xf32>
    %201 = tpu.concatenate %125, %200 in 0 : vector<16x128xf32>, vector<16x128xf32> -> vector<32x128xf32>
    %202 = arith.addf %3, %201 : vector<32x128xf32>
    %cst_46 = arith.constant dense<0.000000e+00> : vector<32xf32>
    %203 = vector.multi_reduction <add>, %202, %cst_46 [1] : vector<32x128xf32> to vector<32xf32>
    %204 = vector.shape_cast %203 : vector<32xf32> to vector<32x1xf32>
    %cst_47 = arith.constant 1.280000e+02 : f32
    %205 = vector.broadcast %cst_47 : f32 to vector<32x1xf32>
    %206 = arith.divf %204, %205 : vector<32x1xf32>
    %207 = vector.broadcast %206 : vector<32x1xf32> to vector<32x128xf32>
    %208 = arith.subf %202, %207 : vector<32x128xf32>
    %209 = arith.mulf %208, %208 : vector<32x128xf32>
    %cst_48 = arith.constant dense<0.000000e+00> : vector<32xf32>
    %210 = vector.multi_reduction <add>, %209, %cst_48 [1] : vector<32x128xf32> to vector<32xf32>
    %211 = vector.shape_cast %210 : vector<32xf32> to vector<32x1xf32>
    %cst_49 = arith.constant 1.280000e+02 : f32
    %212 = vector.broadcast %cst_49 : f32 to vector<32x1xf32>
    %213 = arith.divf %211, %212 : vector<32x1xf32>
    %cst_50 = arith.constant 9.99999974E-6 : f32
    %214 = vector.broadcast %cst_50 : f32 to vector<32x1xf32>
    %215 = arith.addf %213, %214 : vector<32x1xf32>
    %216 = math.rsqrt %215 : vector<32x1xf32>
    %217 = vector.broadcast %216 : vector<32x1xf32> to vector<32x128xf32>
    %218 = arith.mulf %208, %217 : vector<32x128xf32>
    %219 = vector.broadcast %7 : vector<1x128xf32> to vector<32x128xf32>
    %220 = arith.mulf %218, %219 : vector<32x128xf32>
    %221 = arith.truncf %220 : vector<32x128xf32> to vector<32x128xbf16>
    %c0_51 = arith.constant 0 : index
    %c0_52 = arith.constant 0 : index
    %c0_53 = arith.constant 0 : index
    %222 = vector.load %arg7[%c0_51, %c0_52, %c0_53] : memref<1x128x512xbf16, #tpu.memory_space<vmem>>, vector<1x128x512xbf16>
    %223 = vector.shape_cast %222 : vector<1x128x512xbf16> to vector<128x512xbf16>
    %cst_54 = arith.constant dense<0.000000e+00> : vector<32x512xf32>
    %224 = tpu.matmul %221, %223, %cst_54 {dimension_numbers = #tpu.dot_dimension_numbers<[1], [0], [0], [1], [0, 0, 1, 1], [], []>} : vector<32x128xbf16>, vector<128x512xbf16>, vector<32x512xf32> -> vector<32x512xf32>
    %225 = vector.extract_strided_slice %224 {offsets = [0, 0], sizes = [32, 256], strides = [1, 1]} : vector<32x512xf32> to vector<32x256xf32>
    %226 = vector.extract_strided_slice %224 {offsets = [0, 256], sizes = [32, 256], strides = [1, 1]} : vector<32x512xf32> to vector<32x256xf32>
    %cst_55 = arith.constant 5.000000e-01 : f32
    %227 = vector.broadcast %cst_55 : f32 to vector<32x256xf32>
    %228 = arith.mulf %227, %225 : vector<32x256xf32>
    %cst_56 = arith.constant 4.471500e-02 : f32
    %229 = vector.broadcast %cst_56 : f32 to vector<32x256xf32>
    %230 = arith.mulf %229, %225 : vector<32x256xf32>
    %231 = arith.mulf %230, %225 : vector<32x256xf32>
    %232 = arith.mulf %231, %225 : vector<32x256xf32>
    %233 = arith.addf %225, %232 : vector<32x256xf32>
    %cst_57 = arith.constant 0.797884583 : f32
    %234 = vector.broadcast %cst_57 : f32 to vector<32x256xf32>
    %235 = arith.mulf %234, %233 : vector<32x256xf32>
    %236 = math.tanh %235 : vector<32x256xf32>
    %cst_58 = arith.constant 1.000000e+00 : f32
    %237 = vector.broadcast %cst_58 : f32 to vector<32x256xf32>
    %238 = arith.addf %237, %236 : vector<32x256xf32>
    %239 = arith.mulf %228, %238 : vector<32x256xf32>
    %240 = arith.mulf %226, %239 : vector<32x256xf32>
    %c0_59 = arith.constant 0 : index
    %c0_60 = arith.constant 0 : index
    %c0_61 = arith.constant 0 : index
    %241 = vector.load %arg8[%c0_59, %c0_60, %c0_61] : memref<1x1x256xf32, #tpu.memory_space<vmem>>, vector<1x1x256xf32>
    %242 = vector.shape_cast %241 : vector<1x1x256xf32> to vector<1x256xf32>
    %cst_62 = arith.constant dense<0.000000e+00> : vector<32xf32>
    %243 = vector.multi_reduction <add>, %240, %cst_62 [1] : vector<32x256xf32> to vector<32xf32>
    %244 = vector.shape_cast %243 : vector<32xf32> to vector<32x1xf32>
    %cst_63 = arith.constant 2.560000e+02 : f32
    %245 = vector.broadcast %cst_63 : f32 to vector<32x1xf32>
    %246 = arith.divf %244, %245 : vector<32x1xf32>
    %247 = vector.broadcast %246 : vector<32x1xf32> to vector<32x256xf32>
    %248 = arith.subf %240, %247 : vector<32x256xf32>
    %249 = arith.mulf %248, %248 : vector<32x256xf32>
    %cst_64 = arith.constant dense<0.000000e+00> : vector<32xf32>
    %250 = vector.multi_reduction <add>, %249, %cst_64 [1] : vector<32x256xf32> to vector<32xf32>
    %251 = vector.shape_cast %250 : vector<32xf32> to vector<32x1xf32>
    %cst_65 = arith.constant 2.560000e+02 : f32
    %252 = vector.broadcast %cst_65 : f32 to vector<32x1xf32>
    %253 = arith.divf %251, %252 : vector<32x1xf32>
    %cst_66 = arith.constant 9.99999974E-6 : f32
    %254 = vector.broadcast %cst_66 : f32 to vector<32x1xf32>
    %255 = arith.addf %253, %254 : vector<32x1xf32>
    %256 = math.rsqrt %255 : vector<32x1xf32>
    %257 = vector.broadcast %256 : vector<32x1xf32> to vector<32x256xf32>
    %258 = arith.mulf %248, %257 : vector<32x256xf32>
    %259 = vector.broadcast %242 : vector<1x256xf32> to vector<32x256xf32>
    %260 = arith.mulf %258, %259 : vector<32x256xf32>
    %261 = arith.truncf %260 : vector<32x256xf32> to vector<32x256xbf16>
    %c0_67 = arith.constant 0 : index
    %c0_68 = arith.constant 0 : index
    %c0_69 = arith.constant 0 : index
    %262 = vector.load %arg9[%c0_67, %c0_68, %c0_69] : memref<1x256x128xbf16, #tpu.memory_space<vmem>>, vector<1x256x128xbf16>
    %263 = vector.shape_cast %262 : vector<1x256x128xbf16> to vector<256x128xbf16>
    %cst_70 = arith.constant dense<0.000000e+00> : vector<32x128xf32>
    %264 = tpu.matmul %261, %263, %cst_70 {dimension_numbers = #tpu.dot_dimension_numbers<[1], [0], [0], [1], [0, 0, 1, 1], [], []>} : vector<32x256xbf16>, vector<256x128xbf16>, vector<32x128xf32> -> vector<32x128xf32>
    %265 = arith.addf %264, %202 : vector<32x128xf32>
    %c0_71 = arith.constant 0 : index
    %c0_72 = arith.constant 0 : index
    %266 = vector.load %arg12[%c0_71, %c0_72] : memref<32x128xf32, #tpu.memory_space<vmem>>, vector<32x128xf32>
    tpu.vector_store %arg12[%c0_71, %c0_72], %265 {strides = array<i32>} : memref<32x128xf32, #tpu.memory_space<vmem>>, vector<32x128xf32>,
    %c1_i32 = arith.constant 1 : i32
    %267 = arith.cmpi eq, %arg1, %c1_i32 : i32
    %268 = arith.extui %267 : i1 to i32
    %c0_i32_73 = arith.constant 0 : i32
    %269 = arith.cmpi ne, %268, %c0_i32_73 : i32
    scf.if %269 {
      %c0_74 = arith.constant 0 : index
      %c0_75 = arith.constant 0 : index
      %270 = vector.load %arg10[%c0_74, %c0_75] : memref<1x128xf32, #tpu.memory_space<vmem>>, vector<1x128xf32>
      %cst_76 = arith.constant dense<0.000000e+00> : vector<32xf32>
      %271 = vector.multi_reduction <add>, %265, %cst_76 [1] : vector<32x128xf32> to vector<32xf32>
      %272 = vector.shape_cast %271 : vector<32xf32> to vector<32x1xf32>
      %cst_77 = arith.constant 1.280000e+02 : f32
      %273 = vector.broadcast %cst_77 : f32 to vector<32x1xf32>
      %274 = arith.divf %272, %273 : vector<32x1xf32>
      %275 = vector.broadcast %274 : vector<32x1xf32> to vector<32x128xf32>
      %276 = arith.subf %265, %275 : vector<32x128xf32>
      %277 = arith.mulf %276, %276 : vector<32x128xf32>
      %cst_78 = arith.constant dense<0.000000e+00> : vector<32xf32>
      %278 = vector.multi_reduction <add>, %277, %cst_78 [1] : vector<32x128xf32> to vector<32xf32>
      %279 = vector.shape_cast %278 : vector<32xf32> to vector<32x1xf32>
      %cst_79 = arith.constant 1.280000e+02 : f32
      %280 = vector.broadcast %cst_79 : f32 to vector<32x1xf32>
      %281 = arith.divf %279, %280 : vector<32x1xf32>
      %cst_80 = arith.constant 9.99999974E-6 : f32
      %282 = vector.broadcast %cst_80 : f32 to vector<32x1xf32>
      %283 = arith.addf %281, %282 : vector<32x1xf32>
      %284 = math.rsqrt %283 : vector<32x1xf32>
      %285 = vector.broadcast %284 : vector<32x1xf32> to vector<32x128xf32>
      %286 = arith.mulf %276, %285 : vector<32x128xf32>
      %287 = vector.broadcast %270 : vector<1x128xf32> to vector<32x128xf32>
      %288 = arith.mulf %286, %287 : vector<32x128xf32>
      %289 = vector.shape_cast %288 : vector<32x128xf32> to vector<2x16x128xf32>
      %c0_81 = arith.constant 0 : index
      %c0_82 = arith.constant 0 : index
      %c0_83 = arith.constant 0 : index
      %290 = vector.load %arg11[%c0_81, %c0_82, %c0_83] : memref<2x16x128xf32, #tpu.memory_space<vmem>>, vector<2x16x128xf32>
      tpu.vector_store %arg11[%c0_81, %c0_82, %c0_83], %289 {strides = array<i32>} : memref<2x16x128xf32, #tpu.memory_space<vmem>>, vector<2x16x128xf32>,
    } else {
    }
    return
  }
  func.func @transform_0(%arg0: i32, %arg1: i32) -> (i32, i32, i32) {
    %c0_i32 = arith.constant 0 : i32
    %c0_i32_0 = arith.constant 0 : i32
    %c0_i32_1 = arith.constant 0 : i32
    return %arg0, %c0_i32, %c0_i32_0 : i32, i32, i32
  }
  func.func @transform_1(%arg0: i32, %arg1: i32) -> (i32, i32, i32) {
    %c0_i32 = arith.constant 0 : i32
    %c0_i32_0 = arith.constant 0 : i32
    %c0_i32_1 = arith.constant 0 : i32
    return %arg1, %c0_i32, %c0_i32_0 : i32, i32, i32
  }
  func.func @transform_2(%arg0: i32, %arg1: i32) -> (i32, i32, i32, i32) {
    %c0_i32 = arith.constant 0 : i32
    %c0_i32_0 = arith.constant 0 : i32
    %c0_i32_1 = arith.constant 0 : i32
    %c0_i32_2 = arith.constant 0 : i32
    return %arg1, %c0_i32, %c0_i32_0, %c0_i32_1 : i32, i32, i32, i32
  }
  func.func @transform_3(%arg0: i32, %arg1: i32) -> (i32, i32, i32) {
    %c0_i32 = arith.constant 0 : i32
    %c0_i32_0 = arith.constant 0 : i32
    %c0_i32_1 = arith.constant 0 : i32
    return %arg1, %c0_i32, %c0_i32_0 : i32, i32, i32
  }
  func.func @transform_4(%arg0: i32, %arg1: i32) -> (i32, i32, i32) {
    %c0_i32 = arith.constant 0 : i32
    %c0_i32_0 = arith.constant 0 : i32
    %c0_i32_1 = arith.constant 0 : i32
    return %arg1, %c0_i32, %c0_i32_0 : i32, i32, i32
  }
  func.func @transform_5(%arg0: i32, %arg1: i32) -> (i32, i32, i32) {
    %c0_i32 = arith.constant 0 : i32
    %c0_i32_0 = arith.constant 0 : i32
    %c0_i32_1 = arith.constant 0 : i32
    return %arg1, %c0_i32, %c0_i32_0 : i32, i32, i32
  }
  func.func @transform_6(%arg0: i32, %arg1: i32) -> (i32, i32, i32) {
    %c0_i32 = arith.constant 0 : i32
    %c0_i32_0 = arith.constant 0 : i32
    %c0_i32_1 = arith.constant 0 : i32
    return %arg1, %c0_i32, %c0_i32_0 : i32, i32, i32
  }
  func.func @transform_7(%arg0: i32, %arg1: i32) -> (i32, i32, i32) {
    %c0_i32 = arith.constant 0 : i32
    %c0_i32_0 = arith.constant 0 : i32
    %c0_i32_1 = arith.constant 0 : i32
    return %arg1, %c0_i32, %c0_i32_0 : i32, i32, i32
  }
  func.func @transform_8(%arg0: i32, %arg1: i32) -> (i32, i32) {
    %c0_i32 = arith.constant 0 : i32
    %c0_i32_0 = arith.constant 0 : i32
    %c0_i32_1 = arith.constant 0 : i32
    return %c0_i32, %c0_i32_0 : i32, i32
  }
  func.func @transform_9(%arg0: i32, %arg1: i32) -> (i32, i32, i32) {
    %c0_i32 = arith.constant 0 : i32
    %c0_i32_0 = arith.constant 0 : i32
    %c0_i32_1 = arith.constant 0 : i32
    return %arg0, %c0_i32, %c0_i32_0 : i32, i32, i32
  }
}

</mosaic_0001>

<bundles_post_ra>
// kernel: self_transformer_blocks.1
= control target key start
LH: loop header
LB: loop body
LE: loop exit
PB: predicated region body
PF: predicated region fallthrough
CT: control target
= control target key end

     0   :  { %s4889_s0 = inlined_call_operand.hbm [shape: f32[2,16,128], index: 0, kind: input, shape index: {}]   ;;  %s4890_s1 = inlined_call_operand.hbm [shape: f32[2,2,128], index: 1, kind: input, shape index: {}]   ;;  %s4891_s2 = inlined_call_operand.hbm [shape: f32[2,6,1,64], index: 2, kind: input, shape index: {}]   ;;  %s4892_s3 = inlined_call_operand.hbm [shape: bf16[2,128,384], index: 3, kind: input, shape index: {}]   ;;  %s4893_s4 = inlined_call_operand.hbm [shape: bf16[2,128,128], index: 4, kind: input, shape index: {}]   ;;  %s4894_s5 = inlined_call_operand.hbm [shape: bf16[2,128,512], index: 5, kind: input, shape index: {}]   ;;  %s4895_s6 = inlined_call_operand.hbm [shape: f32[2,1,256], index: 6, kind: input, shape index: {}]   ;;  %s4896_s7 = inlined_call_operand.hbm [shape: bf16[2,256,128], index: 7, kind: input, shape index: {}]   ;;  %s4897_s8 = inlined_call_operand.vmem [shape: f32[1,128], index: 8, kind: input, shape index: {}]   ;;  %s4898_s9 = inlined_call_operand.hbm [shape: f32[2,16,128], index: 9, kind: output, shape index: {}]  }
   0x1   :  { %4906 = sst [smem:[#allocation28_spill]] %s4889_s0 }
   0x2   :  { %4907 = sst [smem:[#allocation29_spill]] %s4890_s1 }
   0x3   :  { %4908 = sst [smem:[#allocation30_spill]] %s4892_s3 }
   0x4   :  { %4909 = sst [smem:[#allocation31_spill]] %s4895_s6 }
   0x5   :  { %4910 = sst [smem:[#allocation32_spill]] %s4897_s8 }
   0x6   :  { %4911 = sst [smem:[#allocation33_spill]] %s4898_s9 }
   0x7   :  { %14 = vsyncpa [#allocation4], 0 }
   0x8   :  { %15 = vsyncpa [#allocation7], 0 }
   0x9   :  { %17 = vsyncpa [#allocation7 + $0x1], 0 }
   0xa   :  { %18 = vsyncpa [#allocation10], 0 }
   0xb   :  { %20 = vsyncpa [#allocation10 + $0x1], 0 }
   0xc   :  { %21 = vsyncpa [#allocation13], 0 }
   0xd   :  { %23 = vsyncpa [#allocation13 + $0x1], 0 }
   0xe   :  { %24 = vsyncpa [#allocation16], 0 }
   0xf   :  { %26 = vsyncpa [#allocation16 + $0x1], 0 }
  0x10   :  { %27 = vsyncpa [#allocation5], 0  ;;  %s4048_s30 = smov 0   ;;  %s4050_s10 = smov 0  }
  0x11   :  { %s4052_s11 = smov 0   ;;  %s4054_s12 = smov 0  }
  0x12   :  { %s4056_s13 = smov 0   ;;  %s4058_s14 = smov 0  }
  0x13 LB: > { %4912 = sst [smem:[#allocation24_spill]] %s3960_s11  ;;  %s42_s15 = sadd.s32 1, %s3968_s13  ;;  %s3972_s14 = sphi %s4058_s14, %s33_s14   ;;  %s3968_s13 = sphi %s4056_s13, %s4940_s13   ;;  %s3964_s12 = sphi %s4054_s12, %s4939_s12   ;;  %s3960_s11 = sphi %s4052_s11, %s4935_s11   ;;  %s3956_s10 = sphi %s4050_s10, %s4938_s10   ;;  %s3952_s30 = sphi %s4048_s30, %s4937_s30  }
  0x14   : > { %4913 = sst [smem:[#allocation25_spill]] %s3964_s12  ;;  %s78_s16 = sadd.s32 1, %s3960_s11 }
  0x15   : > { %p43_p0 = scmp.ge.s32.totalorder %s42_s15, 2  ;;  %p85_p1 = scmp.ne.s32.totalorder %s3960_s11, %s3956_s10 }
  0x16   : > { %p86_p2 = scmp.eq.s32.totalorder %s3972_s14, 0  ;;  %p3318_p4 = scmp.lt.s32.totalorder %s3972_s14, 2 }
  0x17   : > { %s4942_s15 = smov (%p43_p0, %s42_s15), 0  ;;  %s4089_s18 = sand.u32 1, %s3972_s14  }
  0x18   : > { %4914 = sst [smem:[#allocation26_spill]] %s4942_s15  ;;  %p87_p3 = por %p86_p2, %p85_p1 }
  0x19   : > { %s75_s17 = ssub.s32 %s3968_s13, %s4942_s15  ;;  %s4092_s19 = sand.u32 1, %s3960_s11  }
  0x1a   : > { %p76_p5 = scmp.eq.s32.totalorder %s75_s17, 0  ;;  %s2952_s20 = sshll.u32 %s3968_s13, 5 }
  0x1b   : > { %s4899_s22 = sshll.u32 %s4092_s19, 1  ;;  %s4916_s1 = sld [smem:[#allocation29_spill]] }
  0x1c   : > { %s4096_s21 = scalar_select %p76_p5, %s3960_s11, %s78_s16  }
  0x1d   : > { %p4102_p6 = pnand %p3318_p4, %p87_p3  ;;  %s342_s27 = scalar_lea.vmem [#allocation6], %s4899_s22 }
  0x1e   : > { %4915 = sst [smem:[#allocation27_spill]] %s4096_s21  ;;  %s349_s28 = sshll.u32 %s342_s27, 4  ;;  %s350_s28 = int_to_ptr.vmem [resolvable:$true] %s349_s28 }
  0x1f   : > { %s4902_s29 = scalar_lea.sflag [#allocation7], %s4089_s18  ;;  %p4111_p7 = pneg %p4102_p6 }
  0x20   : > { %s3669_s16 = scalar_lea.vmem %s350_s28, 32  ;;  %s3974_s23 = smov [#allocation6]  }
  0x21   : > { %s347_s25 = scalar_lea.hbm %s4916_s1, %s2952_s20  ;;  %p3670_p8 = scmp.ne.s32.totalorder %s350_s28, %s3669_s16 }
  0x22   : > { %s3674_s24 = sshll.u32 %s3974_s23, 4  ;;  %s3675_s24 = int_to_ptr.vmem [resolvable:$false] %s3674_s24 }
  0x23   : > { %p3672_p9 = pnand %p3670_p8, %p4111_p7  ;;  %s3676_s1 = scalar_lea.vmem %s3675_s24, 64 }
  0x24   : > { %p3677_p11 = scmp.lt.s32.totalorder %s350_s28, %s3675_s24  ;;  %p3678_p12 = scmp.lt.s32.totalorder %s3676_s1, %s3669_s16 }
  0x25   : > { %p3673_p10 = pneg %p3672_p9 }
  0x26   : > { %p3679_p13 = por %p3678_p12, %p3677_p11 }
  0x28   : > { %p3680_p0 = pnand %p3679_p13, %p3673_p10 }
  0x2a   : > { %3683 = shalt.err (!%p3680_p0)
}
  0x2b   : > { %3298 = dma.hbm_to_vmem [thread:$0]  (!%p4102_p6), %s347_s25, 32, %s350_s28, %s4902_s29  }
  0x2c   : > { %s4919_s6 = sld [smem:[#allocation31_spill]]  ;;  %s3265_s15 = smul.u32 192, %s4092_s19 }
  0x2d   : > { %s3266_s24 = smul.u32 3072, %s3968_s13  ;;  %s4920_s3 = sld [smem:[#allocation30_spill]] }
  0x2e   : > { %s381_s11 = scalar_lea.vmem [#allocation9], %s3265_s15  ;;  %s4904_s8 = scalar_lea.sflag [#allocation10], %s4089_s18 }
  0x2f   : > { %s388_s9 = sshll.u32 %s381_s11, 4  ;;  %s3975_s25 = smov [#allocation9]   ;;  %s389_s9 = int_to_ptr.vmem [resolvable:$true] %s388_s9 }
  0x30   : > { %s3697_s12 = scalar_lea.vmem %s389_s9, 3072  ;;  %s3702_s28 = sshll.u32 %s3975_s25, 4  ;;  %s3703_s28 = int_to_ptr.vmem [resolvable:$false] %s3702_s28 }
  0x31   : > { %p3698_p1 = scmp.ne.s32.totalorder %s389_s9, %s3697_s12  ;;  %p3705_p4 = scmp.lt.s32.totalorder %s389_s9, %s3703_s28 }
  0x32   : > { %s4124_s23 = scalar_lea.hbm %s4919_s6, %s2952_s20  ;;  %s3704_s20 = scalar_lea.vmem %s3703_s28, 6144 }
  0x33   : > { %s387_s21 = scalar_lea.hbm %s4920_s3, %s3266_s24  ;;  %p3700_p2 = pnand %p3698_p1, %p4111_p7 }
  0x34   : > { %p3706_p5 = scmp.lt.s32.totalorder %s3704_s20, %s3697_s12 }
  0x35   : > { %p3701_p3 = pneg %p3700_p2 }
  0x36   : > { %p3707_p8 = por %p3706_p5, %p3705_p4 }
  0x38   : > { %p3708_p9 = pnand %p3707_p8, %p3701_p3 }
  0x3a   : > { %3711 = shalt.err (!%p3708_p9)
}
  0x3b   : > { %s3976_s22 = smov 192   ;;  %s3977_s11 = smov 12  }
  0x3c   : > { %3304 = dma.hbm_to_vmem [thread:$0]  (!%p4102_p6), %s387_s21, 3072, %s389_s9, %s4904_s8, %s3976_s22, %s3976_s22, %s3977_s11  }
  0x3d   : > { %s2958_s15 = sshll.u32 %s4092_s19, 8  ;;  %s3080_s27 = sshll.u32 %s3968_s13, 12 }
  0x3e   : > { %s429_s12 = scalar_lea.hbm %s4894_s5, %s3080_s27  ;;  %s423_s16 = scalar_lea.vmem [#allocation12], %s2958_s15 }
  0x3f   : > { %s430_s25 = sshll.u32 %s423_s16, 4  ;;  %s4903_s28 = scalar_lea.sflag [#allocation13], %s4089_s18  ;;  %s431_s25 = int_to_ptr.vmem [resolvable:$true] %s430_s25 }
  0x40   : > { %s3725_s20 = scalar_lea.vmem %s431_s25, 4096  ;;  %s3978_s29 = smov [#allocation12]  }
  0x41   : > { %p3726_p10 = scmp.ne.s32.totalorder %s431_s25, %s3725_s20  ;;  %s3730_s3 = sshll.u32 %s3978_s29, 4  ;;  %s3731_s3 = int_to_ptr.vmem [resolvable:$false] %s3730_s3 }
  0x42   : > { %s3732_s6 = scalar_lea.vmem %s3731_s3, 8192  ;;  %p3733_p13 = scmp.lt.s32.totalorder %s431_s25, %s3731_s3 }
  0x43   : > { %p3728_p11 = pnand %p3726_p10, %p4111_p7  ;;  %p3734_p0 = scmp.lt.s32.totalorder %s3732_s6, %s3725_s20 }
  0x45   : > { %p3729_p12 = pneg %p3728_p11  ;;  %p3735_p1 = por %p3734_p0, %p3733_p13 }
  0x47   : > { %p3736_p2 = pnand %p3735_p1, %p3729_p12 }
  0x49   : > { %3739 = shalt.err (!%p3736_p2)
}
  0x4a   : > { %s3979_s9 = smov 256   ;;  %s4905_s21 = smov 16  }
  0x4b   : > { %3310 = dma.hbm_to_vmem [thread:$0]  (!%p4102_p6), %s429_s12, 4096, %s431_s25, %s4903_s28, %s3979_s9, %s3979_s9, %s4905_s21  }
  0x4c   : > { %s4152_s3 = sadd.s32 4294967295, %s3972_s14   ;;  %p91_p3 = scmp.ne.s32.totalorder %s3956_s10, %s3952_s30 }
  0x4d   : > { %p92_p4 = scmp.eq.s32.totalorder %s4152_s3, 0  ;;  %p2948_p5 = scmp.ge.s32.totalorder %s3972_s14, 1 }
  0x4e   : > { %p305_p8 = scmp.lt.s32.totalorder %s3972_s14, 3  ;;  %s3981_s22 = smov [#allocation3]  }
  0x4f   : > { %p4161_p9 = por %p92_p4, %p91_p3  ;;  %s321_s11 = sshll.u32 %s3981_s22, 4  ;;  %s322_s11 = int_to_ptr.vmem [resolvable:$true] %s321_s11 }
  0x50   : > { %p4165_p10 = pnand %p2948_p5, %p305_p8  ;;  %s3263_s15 = smul.u32 6, %s4092_s19 }
  0x51   : > { %s3264_s27 = smul.u32 96, %s3968_s13  ;;  %s3751_s16 = scalar_lea.vmem %s322_s11, 512 }
  0x52   : > { %p3291_p11 = pneg %p4165_p10  ;;  %p3752_p0 = scmp.ne.s32.totalorder %s322_s11, %s3751_s16 }
  0x53   : > { %s4182_s12 = scalar_lea.hbm %s4891_s2, %s3264_s27  ;;  %p3759_p3 = scmp.lt.s32.totalorder %s322_s11, %s322_s11 }
  0x54   : > { %p4174_p12 = pnand %p3291_p11, %p92_p4  ;;  %p3760_p5 = scmp.lt.s32.totalorder %s3751_s16, %s3751_s16 }
  0x56   : > { %p3742_p13 = pneg %p4174_p12  ;;  %p3761_p8 = por %p3760_p5, %p3759_p3 }
  0x58   : > { %p3754_p1 = pnand %p3752_p0, %p3742_p13 }
  0x5a   : > { %p3755_p2 = pneg %p3754_p1 }
  0x5c   : > { %p3762_p11 = pnand %p3761_p8, %p3755_p2 }
  0x5e   : > { %3765 = shalt.err (!%p3762_p11)
}
  0x5f   : > { %s3982_s25 = smov 128   ;;  %s3983_s20 = smov 8  }
  0x60   : > { %s4924_s0 = sld [smem:[#allocation28_spill]]  ;;  %s360_s27 = scalar_lea.vmem [#allocation8], %s3263_s15 }
  0x61   : > { %s367_s24 = sshll.u32 %s360_s27, 4  ;;  %s2955_s1 = sshll.u32 %s4092_s19, 6  ;;  %s368_s24 = int_to_ptr.vmem [resolvable:$true] %s367_s24 }
  0x62   : > { %s3779_s28 = scalar_lea.vmem %s368_s24, 96  ;;  %s3984_s16 = smov [#allocation8]  }
  0x63   : > { %p3780_p13 = scmp.ne.s32.totalorder %s368_s24, %s3779_s28  ;;  %s3784_s8 = sshll.u32 %s3984_s16, 4  ;;  %s3785_s8 = int_to_ptr.vmem [resolvable:$false] %s3784_s8 }
  0x64   : > { %s3786_s21 = scalar_lea.vmem %s3785_s8, 192  ;;  %p3787_p2 = scmp.lt.s32.totalorder %s368_s24, %s3785_s8 }
  0x65   : > { %p3782_p0 = pnand %p3780_p13, %p4111_p7  ;;  %p3788_p3 = scmp.lt.s32.totalorder %s3786_s21, %s3779_s28 }
  0x66   : > { %3294 = dma.hbm_to_vmem [thread:$0]  (!%p4174_p12), %s4924_s0, 512, %s322_s11, [#allocation4], %s3982_s25, %s3982_s25, %s3983_s20  }
  0x67   : > { %p3783_p1 = pneg %p3782_p0  ;;  %p3789_p5 = por %p3788_p3, %p3787_p2 }
  0x69   : > { %p3790_p8 = pnand %p3789_p5, %p3783_p1 }
  0x6b   : > { %3793 = shalt.err (!%p3790_p8)
}
  0x6c   : > { %s3985_s30 = smov 1   ;;  %s4925_s11 = smov 16  }
  0x6d   : > { %s4926_s15 = scalar_lea.sflag [#allocation7], %s4089_s18  ;;  %s3079_s25 = sshll.u32 %s3968_s13, 10 }
  0x6e   : > { %3301 = dma.hbm_to_vmem [thread:$0]  (!%p4102_p6), %s4182_s12, 96, %s368_s24, %s4926_s15, %s4925_s11, %s4925_s11, %s3985_s30  }
  0x6f   : > { %s402_s20 = scalar_lea.vmem [#allocation11], %s2955_s1  ;;  %s408_s28 = scalar_lea.hbm %s4893_s4, %s3079_s25 }
  0x70   : > { %s409_s9 = sshll.u32 %s402_s20, 4  ;;  %s3986_s27 = smov [#allocation11]   ;;  %s410_s9 = int_to_ptr.vmem [resolvable:$true] %s409_s9 }
  0x71   : > { %s3807_s21 = scalar_lea.vmem %s410_s9, 1024  ;;  %s3812_s16 = sshll.u32 %s3986_s27, 4  ;;  %s3813_s16 = int_to_ptr.vmem [resolvable:$false] %s3812_s16 }
  0x72   : > { %p3808_p12 = scmp.ne.s32.totalorder %s410_s9, %s3807_s21  ;;  %s3814_s0 = scalar_lea.vmem %s3813_s16, 2048 }
  0x73   : > { %p3815_p0 = scmp.lt.s32.totalorder %s410_s9, %s3813_s16  ;;  %p3816_p1 = scmp.lt.s32.totalorder %s3814_s0, %s3807_s21 }
  0x74   : > { %p3810_p11 = pnand %p3808_p12, %p4111_p7 }
  0x75   : > { %p3817_p2 = por %p3816_p1, %p3815_p0 }
  0x76   : > { %p3811_p13 = pneg %p3810_p11 }
  0x78   : > { %p3818_p3 = pnand %p3817_p2, %p3811_p13 }
  0x7a   : > { %3821 = shalt.err (!%p3818_p3)
}
  0x7b   : > { %s3987_s12 = smov 64   ;;  %s3988_s24 = smov 4  }
  0x7c   : > { %s4927_s1 = scalar_lea.sflag [#allocation10], %s4089_s18  ;;  %s4928_s30 = sshll.u32 %s4092_s19, 1 }
  0x7d   : > { %3307 = dma.hbm_to_vmem [thread:$0]  (!%p4102_p6), %s408_s28, 1024, %s410_s9, %s4927_s1, %s3987_s12, %s3987_s12, %s3988_s24  }
  0x7e   : > { %s444_s11 = scalar_lea.vmem [#allocation14], %s4928_s30  ;;  %s2964_s0 = sshll.u32 %s4092_s19, 7 }
  0x7f   : > { %s452_s15 = sshll.u32 %s444_s11, 4  ;;  %s3989_s20 = smov [#allocation14]   ;;  %s453_s15 = int_to_ptr.vmem [resolvable:$true] %s452_s15 }
  0x80   : > { %s3835_s25 = scalar_lea.vmem %s453_s15, 32  ;;  %s3840_s22 = sshll.u32 %s3989_s20, 4  ;;  %s3841_s22 = int_to_ptr.vmem [resolvable:$false] %s3840_s22 }
  0x81   : > { %p3836_p5 = scmp.ne.s32.totalorder %s453_s15, %s3835_s25  ;;  %s3842_s8 = scalar_lea.vmem %s3841_s22, 64 }
  0x82   : > { %p3843_p11 = scmp.lt.s32.totalorder %s453_s15, %s3841_s22  ;;  %p3844_p13 = scmp.lt.s32.totalorder %s3842_s8, %s3835_s25 }
  0x83   : > { %p3838_p8 = pnand %p3836_p5, %p4111_p7 }
  0x84   : > { %p3845_p0 = por %p3844_p13, %p3843_p11 }
  0x85   : > { %p3839_p12 = pneg %p3838_p8 }
  0x87   : > { %p3846_p1 = pnand %p3845_p0, %p3839_p12 }
  0x89   : > { %3849 = shalt.err (!%p3846_p1)
}
  0x8a   : > { %s4929_s9 = scalar_lea.sflag [#allocation13], %s4089_s18  ;;  %s3082_s28 = sshll.u32 %s3968_s13, 11 }
  0x8b   : > { %3313 = dma.hbm_to_vmem [thread:$0]  (!%p4102_p6), %s4124_s23, 32, %s453_s15, %s4929_s9  }
  0x8c   : > { %s469_s16 = scalar_lea.hbm %s4896_s7, %s3082_s28  ;;  %s463_s1 = scalar_lea.vmem [#allocation15], %s2964_s0 }
  0x8d   : > { %s470_s30 = sshll.u32 %s463_s1, 4  ;;  %s460_s11 = scalar_lea.sflag [#allocation16], %s4092_s19  ;;  %s471_s30 = int_to_ptr.vmem [resolvable:$true] %s470_s30 }
  0x8e   : > { %s3863_s25 = scalar_lea.vmem %s471_s30, 2048  ;;  %s3990_s18 = smov [#allocation15]  }
  0x8f   : > { %p3864_p2 = scmp.ne.s32.totalorder %s471_s30, %s3863_s25  ;;  %s3868_s20 = sshll.u32 %s3990_s18, 4  ;;  %s3869_s20 = int_to_ptr.vmem [resolvable:$false] %s3868_s20 }
  0x90   : > { %s3870_s22 = scalar_lea.vmem %s3869_s20, 4096  ;;  %p3871_p8 = scmp.lt.s32.totalorder %s471_s30, %s3869_s20 }
  0x91   : > { %p3866_p3 = pnand %p3864_p2, %p4111_p7  ;;  %p3872_p12 = scmp.lt.s32.totalorder %s3870_s22, %s3863_s25 }
  0x93   : > { %p3867_p5 = pneg %p3866_p3  ;;  %p3873_p11 = por %p3872_p12, %p3871_p8 }
  0x95   : > { %p3874_p13 = pnand %p3873_p11, %p3867_p5 }
  0x97   : > { %3877 = shalt.err (!%p3874_p13)
}
  0x98   : > { %3316 = dma.hbm_to_vmem [thread:$0]  (!%p4102_p6), %s469_s16, 2048, %s471_s30, %s460_s11, %s3987_s12, %s3987_s12, %s3988_s24  }
  0x99   : > { %482 = sbr.rel (%p4165_p10) target bundleno = 3680 (0xe60), region = 56 }
  0x9e   : > { %3927 = dma.done.wait (%p92_p4), [#allocation4], 512  }
  0x9f   : > { %3929 = vsyncadd (%p92_p4), [#allocation4], 4294966784  ;;  %s488_s19 = sand.u32 1, %s4152_s3   ;;  %s490_s17 = sand.u32 1, %s3956_s10  }
  0xa0   : > { %s2969_s23 = sshll.u32 %s490_s17, 1  ;;  %s489_s26 = scalar_lea.sflag [#allocation7], %s488_s19 }
  0xa1   : > { %s4244_s15 = scalar_lea.vmem [#allocation6], %s2969_s23 }
  0xa2   : > { %3931 = dma.done.wait (%p4161_p9), %s489_s26, 128  }
  0xa3   : > { %3933 = vsyncadd (%p4161_p9), %s489_s26, 4294967168  ;;  %s3267_s29 = smul.u32 6, %s490_s17  ;;  %s507_s0 = scalar_lea.sflag [#allocation10], %s488_s19 }
  0xa4   : > { %s3268_s12 = smul.u32 192, %s490_s17 }
  0xa5   : > { %s4250_s24 = scalar_lea.vmem [#allocation8], %s3267_s29 }
  0xa6   : > { %s4252_s8 = scalar_lea.vmem [#allocation9], %s3268_s12 }
  0xa7   : > { %3935 = dma.done.wait (%p4161_p9), %s507_s0, 4096  }
  0xa8   : > { %3937 = vsyncadd (%p4161_p9), %s507_s0, 4294963200  ;;  %s2970_s9 = sshll.u32 %s490_s17, 6  ;;  %s2971_s28 = sshll.u32 %s490_s17, 8 }
  0xa9   : > { %s4258_s21 = scalar_lea.vmem [#allocation11], %s2970_s9  ;;  %s525_s27 = scalar_lea.sflag [#allocation13], %s488_s19 }
  0xaa   : > { %s4260_s16 = scalar_lea.vmem [#allocation12], %s2971_s28 }
  0xab   : > { %3939 = dma.done.wait (%p4161_p9), %s525_s27, 4128  }
  0xac   : > { %3941 = vsyncadd (%p4161_p9), %s525_s27, 4294963168  ;;  %s2973_s1 = sshll.u32 %s490_s17, 7  ;;  %s4266_s30 = scalar_lea.vmem [#allocation14], %s2969_s23 }
  0xad   : > { %s543_s11 = scalar_lea.sflag [#allocation16], %s490_s17  ;;  %s4268_s25 = scalar_lea.vmem [#allocation15], %s2973_s1 }
  0xae   : > { %3943 = dma.done.wait (%p4161_p9), %s543_s11, 2048  }
  0xaf   : > { %3945 = vsyncadd (%p4161_p9), %s543_s11, 4294965248  ;;  %s4930_s18 = sld [smem:[#allocation25_spill]] }
  0xb5   : > { %p2974_p6 = scmp.ne.s32.totalorder %s4930_s18, 0 }
  0xb7   : > { %612 = sbr.rel (%p2974_p6) target bundleno = 191 (0xbf), region = 92 }
  0xbc   : > { %v613_v0 = vld [vmem:[#allocation3] sm:$0xff]  ;;  %v614_v1 = vld [vmem:[#allocation3 + $0x8] sm:$0xff]  ;;  %v615_v2 = vld [vmem:[#allocation3 + $0x10] sm:$0xff] }
  0xbd   : > { %617 = vst [vmem:[#allocation2 + $0x10] sm:$0xff] %v613_v0  ;;  %618 = vst [vmem:[#allocation2] sm:$0xff] %v614_v1  ;;  %v616_v3 = vld [vmem:[#allocation3 + $0x18] sm:$0xff] }
  0xbe   : > { %619 = vst [vmem:[#allocation2 + $0x18] sm:$0xff] %v615_v2  ;;  %620 = vst [vmem:[#allocation2 + $0x8] sm:$0xff] %v616_v3 }
  0xbf PF: > { %v3407_v6 = vld [vmem:[%s4252_s8 + $0xac] ss:$12 sps:$4 sm:$0xff]   ;;  %v3409_v7 = vld [vmem:[%s4252_s8 + $0xa8] ss:$12 sps:$4 sm:$0xff]   ;;  %v3412_v17 = vld [vmem:[%s4252_s8 + $0x90] ss:$12 sps:$4 sm:$0xff]   ;;  %v695_v39 = vlaneseq }
  0xc0   : > { %865 = vmatprep.subr.bf16.mxu0 %v3407_v6  ;;  %v3410_v16 = vld [vmem:[%s4252_s8 + $0x94] ss:$12 sps:$4 sm:$0xff]   ;;  %v3413_v18 = vld [vmem:[%s4252_s8 + $0x7c] ss:$12 sps:$4 sm:$0xff]   ;;  %v3415_v19 = vld [vmem:[%s4252_s8 + $0x78] ss:$12 sps:$4 sm:$0xff]  }
  0xc1   : > { %866 = vmatpush1.bf16.msra.mxu0 %v3409_v7  ;;  %v3416_v20 = vld [vmem:[%s4252_s8 + $0x64] ss:$12 sps:$4 sm:$0xff]   ;;  %v3418_v21 = vld [vmem:[%s4252_s8 + $0x60] ss:$12 sps:$4 sm:$0xff]   ;;  %v3421_v23 = vld [vmem:[%s4252_s8 + $0x48] ss:$12 sps:$4 sm:$0xff]  }
  0xc2   : > { %867 = vmatprep.subr.bf16.mxu0 %v3410_v16  ;;  %v3419_v22 = vld [vmem:[%s4252_s8 + $0x4c] ss:$12 sps:$4 sm:$0xff]   ;;  %v3422_v24 = vld [vmem:[%s4252_s8 + $0x34] ss:$12 sps:$4 sm:$0xff]   ;;  %v3991_v25 = vmov 0   ;;  %v4292_v40 = vshrl.u32 %v695_v39, 7 }
  0xc3   : > { %897 = vmatprep.mubr.bf16.mxu0 %v3991_v25  ;;  %v3424_v26 = vld [vmem:[%s4252_s8 + $0x30] ss:$12 sps:$4 sm:$0xff]   ;;  %v3427_v28 = vld [vmem:[%s4252_s8 + $0x18] ss:$12 sps:$4 sm:$0xff]   ;;  %v3430_v30 = vld [vmem:[%s4252_s8] ss:$12 sps:$4 sm:$0xff]  }
  0xc4   : > { %v621_v4 = vld [vmem:[#allocation2 + $0x10] sm:$0xff]  ;;  %v622_v5 = vld [vmem:[#allocation2] sm:$0xff]  ;;  %v3425_v27 = vld [vmem:[%s4252_s8 + $0x1c] ss:$12 sps:$4 sm:$0xff]   ;;  %v4295_v41 = vsub.s32 0, %v4292_v40  ;;  %s3992_s6 = smov 64  }
  0xc5   : > { %650 = vadd.xlane.f32.xlu0 %v621_v4  ;;  %868 = vmatpush1.bf16.msra.mxu0 %v3412_v17  ;;  %v3428_v29 = vld [vmem:[%s4252_s8 + $0x4] ss:$12 sps:$4 sm:$0xff]   ;;  %v623_v31 = vld [vmem:[#allocation2 + $0x18] sm:$0xff]  ;;  %v624_v32 = vld [vmem:[#allocation2 + $0x8] sm:$0xff]  ;;  %vm995_vm0 = vcmask 523264   ;;  %vm635_vm1 = vcmask 516096  }
  0xc6   : > { %869 = vmatprep.subr.bf16.mxu0 %v3413_v18  ;;  %v625_v43 = vld [vmem:[%s4244_s15] sm:$0x3]  ;;  %v3432_v0 = vld [vmem:[%s4252_s8 + $0x98] ss:$12 sps:$4 sm:$0xff]   ;;  %v3433_v1 = vld [vmem:[%s4252_s8 + $0x80] ss:$12 sps:$4 sm:$0xff]  }
  0xc7   : > { %v4299_v45 = vrot.slane %v625_v43, %v4295_v41  ;;  %v3431_v63 = vld [vmem:[%s4252_s8 + $0xb0] ss:$12 sps:$4 sm:$0xff]   ;;  %v3434_v2 = vld [vmem:[%s4252_s8 + $0x68] ss:$12 sps:$4 sm:$0xff]   ;;  %vm3994_vm2 = vmmov 0   ;;  %vm1194_vm3 = vcmask 130048  }
  0xc8   : > { %3155 = vmatprep.subr.bf16.mxu1 %v3431_v63  ;;  %v3435_v3 = vld [vmem:[%s4252_s8 + $0x50] ss:$12 sps:$4 sm:$0xff]   ;;  %v3438_v6 = vld [vmem:[%s4252_s8 + $0x8] ss:$12 sps:$4 sm:$0xff]   ;;  %s4931_s20 = sld [smem:[#allocation25_spill]] }
  0xc9   : > { %652 = vadd.xlane.f32.xlu0 %v622_v5  ;;  %870 = vmatpush1.bf16.msra.mxu0 %v3415_v19  ;;  %v4345_v16 = vld [vmem:[%s4250_s24 + $0x3] sm:$0x1] }
  0xca   : > { %871 = vmatprep.subr.bf16.mxu0 %v3416_v20  ;;  %3156 = vmatpush3.bf16.msra.mxu1 %v3431_v63  ;;  %v634_v19 = vmul.f32 %v4345_v16, %v4345_v16 }
  0xcb   : > { %3157 = vmatprep.subr.bf16.mxu1 %v3432_v0 }
  0xcd   : > { %872 = vmatpush1.bf16.msra.mxu0 %v3418_v21  ;;  %654 = vadd.xlane.f32.xlu0 %v623_v31  ;;  %v639_v21 = vsel %vm635_vm1, %v634_v19, 0.0 }
  0xce   : > { %873 = vmatprep.subr.bf16.mxu0 %v3419_v22  ;;  %3158 = vmatpush3.bf16.msra.mxu1 %v3432_v0  ;;  %v3993_v22 = vmov 0.0   ;;  %p3073_p7 = scmp.ne.s32.totalorder %s4931_s20, 1 }
  0xcf   : > { %3159 = vmatprep.subr.bf16.mxu1 %v3433_v1  ;;  %s4932_s17 = sld [smem:[#allocation32_spill]] (!%p3073_p7) }
  0xd1   : > { %874 = vmatpush1.bf16.msra.mxu0 %v3421_v23 }
  0xd2   : > { %875 = vmatprep.subr.bf16.mxu0 %v3422_v24  ;;  %3160 = vmatpush3.bf16.msra.mxu1 %v3433_v1 }
  0xd3   : > { %3161 = vmatprep.subr.bf16.mxu1 %v3434_v2 }
  0xd5   : > { %876 = vmatpush1.bf16.msra.mxu0 %v3424_v26 }
  0xd6   : > { %877 = vmatprep.subr.bf16.mxu0 %v3425_v27  ;;  %3162 = vmatpush3.bf16.msra.mxu1 %v3434_v2 }
  0xd7   : > { %3163 = vmatprep.subr.bf16.mxu1 %v3435_v3 }
  0xd9   : > { %878 = vmatpush1.bf16.msra.mxu0 %v3427_v28 }
  0xda   : > { %879 = vmatprep.subr.bf16.mxu0 %v3428_v29  ;;  %3164 = vmatpush3.bf16.msra.mxu1 %v3435_v3 }
  0xdd   : > { %880 = vmatpush1.bf16.msra.mxu0 %v3430_v30 }
  0xde   : > { %3181 = vmatprep.subr.bf16.mxu0 %v3993_v22 }
 0x14e   : > { %v651_v8 = vpop.xlane.xlu0 %650 }
 0x14f   : > { %v659_v9 = vmul.f32 0.0078125, %v651_v8 }
 0x151   : > { %v663_v10 = vsub.f32 %v621_v4, %v659_v9  ;;  %v3436_v4 = vld [vmem:[%s4252_s8 + $0x38] ss:$12 sps:$4 sm:$0xff]  }
 0x152   : > { %v653_v11 = vpop.xlane.xlu0 %652  ;;  %3165 = vmatprep.subr.bf16.mxu1 %v3436_v4 }
 0x153   : > { %v660_v12 = vmul.f32 0.0078125, %v653_v11  ;;  %v667_v13 = vmul.f32 %v663_v10, %v663_v10  ;;  %3166 = vmatpush3.bf16.msra.mxu1 %v3436_v4 }
 0x155   : > { %v664_v14 = vsub.f32 %v622_v5, %v660_v12  ;;  %671 = vadd.xlane.f32.xlu1 %v667_v13  ;;  %v3437_v5 = vld [vmem:[%s4252_s8 + $0x20] ss:$12 sps:$4 sm:$0xff]  }
 0x156   : > { %v655_v55 = vpop.xlane.xlu0 %654  ;;  %3167 = vmatprep.subr.bf16.mxu1 %v3437_v5 }
 0x157   : > { %v668_v15 = vmul.f32 %v664_v14, %v664_v14  ;;  %v661_v56 = vmul.f32 0.0078125, %v655_v55  ;;  %3168 = vmatpush3.bf16.msra.mxu1 %v3437_v5 }
 0x158   : > { %3169 = vmatprep.subr.bf16.mxu1 %v3438_v6 }
 0x159   : > { %673 = vadd.xlane.f32.xlu1 %v668_v15  ;;  %v4320_v57 = vsub.f32 %v623_v31, %v661_v56  ;;  %v626_v56 = vld [vmem:[%s4250_s24] sm:$0x1] }
 0x15b   : > { %v669_v58 = vmul.f32 %v4320_v57, %v4320_v57  ;;  %3170 = vmatpush3.bf16.msra.mxu1 %v3438_v6 }
 0x15c   : > { %3175 = vmatprep.subr.bf16.mxu1 %v3993_v22 }
 0x15d   : > { %656 = vadd.xlane.f32.xlu1 %v624_v32 }
 0x1de   : > { %v672_v33 = vpop.xlane.xlu1 %671 }
 0x1df   : > { %v679_v34 = vmul.f32 0.0078125, %v672_v33 }
 0x1e1   : > { %v683_v35 = vadd.f32 1e-05, %v679_v34 }
 0x1e2   : > { %v674_v36 = vpop.xlane.xlu1 %673 }
 0x1e3   : > { %3519 = vrsqrt.f32 %v683_v35  ;;  %v680_v37 = vmul.f32 0.0078125, %v674_v36 }
 0x1e5   : > { %v684_v38 = vadd.f32 1e-05, %v680_v37 }
 0x1e6   : > { %v657_v59 = vpop.xlane.xlu1 %656 }
 0x1e7   : > { %3521 = vrsqrt.f32 %v684_v38  ;;  %v662_v60 = vmul.f32 0.0078125, %v657_v59  ;;  %v632_v59 = vmul.f32 8.0, %v626_v56 }
 0x1e9   : > { %v4324_v61 = vsub.f32 %v624_v32, %v662_v60  ;;  %v4376_v1 = vrot.slane %v632_v59, %v4295_v41 }
 0x1eb   : > { %v670_v62 = vmul.f32 %v4324_v61, %v4324_v61 }
 0x1f0   : > { %v3520_v42 = vpop.eup %3519 }
 0x1f1   : > { %v691_v44 = vmul.f32 %v3520_v42, %v663_v10 }
 0x1f3   : > { %v699_v48 = vmul.f32 %v4299_v45, %v691_v44 }
 0x1f4   : > { %v3522_v46 = vpop.eup %3521 }
 0x1f5   : > { %v692_v47 = vmul.f32 %v3522_v46, %v664_v14 }
 0x1f7   : > { %v700_v49 = vmul.f32 %v4299_v45, %v692_v47 }
 0x1f9   : > { %v703_v50 = vpack.c.bf16 %v700_v49, %v699_v48  ;;  %v4365_v48 = vld [vmem:[%s4250_s24 + $0x1] sm:$0x1] }
 0x1fb   : > { %898 = vmatmul.mubr.bf16.vlgmr.msra.gmra.mxu0 %v703_v50  ;;  %3171 = vmatprep.mubr.bf16.mxu1 %v703_v50  ;;  %v4369_v50 = vrot.slane %v4365_v48, %v4295_v41 }
 0x1fc   : > { %907 = vmatprep.mubr.bf16.mxu0 %v3991_v25 }
 0x2bb   : > { %v4304_v51 = vpop.f32.mrf.mxu0 }
 0x2bc   : > { %969 = vrot.lane.b32.xlu1 %v4304_v51, %s3992_s6 }
 0x2bd   : > { %v4308_v52 = vpop.f32.mrf.mxu0 }
 0x2be   : > { %977 = vrot.lane.b32.xlu0 %v4308_v52, %s3992_s6 }
 0x2bf   : > { %v4312_v53 = vpop.f32.mrf.mxu0 }
 0x2c0   : > { %971 = vrot.lane.b32.xlu1 %v4312_v53, %s3992_s6 }
 0x2c1   : > { %v4316_v54 = vpop.f32.mrf.mxu0 }
 0x2c4   : > { %979 = vrot.lane.b32.xlu1 %v4316_v54, %s3992_s6 }
 0x2dd   : > { %675 = vadd.xlane.f32.xlu0 %v669_v58 }
 0x2e8   : > { %677 = vadd.xlane.f32.xlu1 %v670_v62 }
 0x32e   : > { %v4336_v7 = vpop.permute.xlu1 %969 }
 0x32f   : > { %v993_v17 = vmul.f32 %v4336_v7, %v4336_v7 }
 0x330   : > { %v978_v8 = vpop.permute.xlu0 %977 }
 0x331   : > { %v1034_v9 = vmul.f32 %v978_v8, %v978_v8  ;;  %v1002_v20 = vsel %vm995_vm0, %v993_v17, 0.0 }
 0x332   : > { %v4338_v10 = vpop.permute.xlu1 %971 }
 0x333   : > { %v994_v11 = vmul.f32 %v4338_v10, %v4338_v10  ;;  %v1042_v12 = vsel %vm995_vm0, %v1034_v9, 0.0 }
 0x334   : > { %1043 = vadd.xlane.f32.xlu0 %v1042_v12 }
 0x335   : > { %v1005_v13 = vsel %vm995_vm0, %v994_v11, 0.0 }
 0x336   : > { %1006 = vadd.xlane.f32.xlu1 %v1005_v13  ;;  %v980_v14 = vpop.permute.xlu1 %979 }
 0x337   : > { %v1035_v15 = vmul.f32 %v980_v14, %v980_v14 }
 0x339   : > { %v1045_v18 = vsel %vm995_vm0, %v1035_v15, 0.0 }
 0x33a   : > { %1046 = vadd.xlane.f32.xlu0 %v1045_v18 }
 0x33e   : > { %1003 = vadd.xlane.f32.xlu0 %v1002_v20 }
 0x342   : > { %640 = vadd.xlane.f32.xlu0 %v639_v21 }
 0x366   : > { %v676_v23 = vpop.xlane.xlu0 %675 }
 0x367   : > { %v681_v24 = vmul.f32 0.0078125, %v676_v23 }
 0x369   : > { %v685_v26 = vadd.f32 1e-05, %v681_v24 }
 0x36b   : > { %3523 = vrsqrt.f32 %v685_v26 }
 0x371   : > { %v678_v27 = vpop.xlane.xlu1 %677 }
 0x372   : > { %v682_v28 = vmul.f32 0.0078125, %v678_v27 }
 0x374   : > { %v686_v29 = vadd.f32 1e-05, %v682_v28 }
 0x376   : > { %3525 = vrsqrt.f32 %v686_v29 }
 0x378   : > { %v3524_v30 = vpop.eup %3523 }
 0x379   : > { %v693_v31 = vmul.f32 %v3524_v30, %v4320_v57 }
 0x37b   : > { %v701_v34 = vmul.f32 %v4299_v45, %v693_v31 }
 0x383   : > { %v3526_v32 = vpop.eup %3525 }
 0x384   : > { %v694_v33 = vmul.f32 %v3526_v32, %v4324_v61 }
 0x386   : > { %v702_v35 = vmul.f32 %v4299_v45, %v694_v33 }
 0x388   : > { %v704_v36 = vpack.c.bf16 %v702_v35, %v701_v34 }
 0x38a   : > { %908 = vmatmul.mubr.bf16.gmra.mxu0 %v704_v36  ;;  %3172 = vmatmul.mubr.bf16.vlgmr.msra.gmra.mxu1 %v704_v36 }
 0x38b   : > { %3183 = vmatprep.mubr.msk.bf16.mxu0 %vm3994_vm2, %v3993_v22  ;;  %3177 = vmatprep.mubr.msk.bf16.mxu1 %vm3994_vm2, %v3993_v22 }
 0x3bd   : > { %v1044_v37 = vpop.xlane.xlu0 %1043 }
 0x3be   : > { %v1050_v38 = vmax.f32 %v1044_v37, 1e-24 }
 0x3bf   : > { %v1007_v39 = vpop.xlane.xlu1 %1006 }
 0x3c0   : > { %3527 = vrsqrt.f32 %v1050_v38  ;;  %v1011_v44 = vmax.f32 %v1007_v39, 1e-24 }
 0x3c3   : > { %v1047_v42 = vpop.xlane.xlu0 %1046 }
 0x3c4   : > { %v1051_v43 = vmax.f32 %v1047_v42, 1e-24 }
 0x3c6   : > { %3529 = vrsqrt.f32 %v1051_v43 }
 0x3c7   : > { %v1004_v45 = vpop.xlane.xlu0 %1003  ;;  %3531 = vrsqrt.f32 %v1011_v44 }
 0x3c8   : > { %v1010_v46 = vmax.f32 %v1004_v45, 1e-24 }
 0x3ca   : > { %3533 = vrsqrt.f32 %v1010_v46 }
 0x3cb   : > { %v641_v9 = vpop.xlane.xlu0 %640 }
 0x3cd   : > { %v3528_v47 = vpop.eup %3527 }
 0x3ce   : > { %v1058_v49 = vmul.f32 %v3528_v47, %v978_v8 }
 0x3d0   : > { %v1068_v60 = vmul.f32 %v4369_v50, %v1058_v49 }
 0x3d3   : > { %v3530_v55 = vpop.eup %3529 }
 0x3d4   : > { %v1059_v57 = vmul.f32 %v3530_v55, %v980_v14  ;;  %v3532_v58 = vpop.eup %3531  ;;  %v643_v14 = vmax.f32 %v641_v9, 1e-24  ;;  %v992_v9 = vmul.f32 %v4312_v53, %v4312_v53 }
 0x3d5   : > { %v1019_v2 = vmul.f32 %v3532_v58, %v4338_v10 }
 0x3d6   : > { %v1069_v61 = vmul.f32 %v4369_v50, %v1059_v57  ;;  %3535 = vrsqrt.f32 %v643_v14  ;;  %v999_v14 = vsel %vm995_vm0, %v992_v9, 0.0 }
 0x3d7   : > { %v3534_v62 = vpop.eup %3533  ;;  %v1029_v5 = vmul.f32 %v4376_v1, %v1019_v2 }
 0x3d8   : > { %v1018_v63 = vmul.f32 %v3534_v62, %v4336_v7  ;;  %v1071_v0 = vpack.c.bf16 %v1069_v61, %v1068_v60  ;;  %v1032_v62 = vmul.f32 %v4308_v52, %v4308_v52 }
 0x3da   : > { %v1123_v3 = vsel %vm995_vm0, %v1071_v0, 0  ;;  %v1028_v4 = vmul.f32 %v4376_v1, %v1018_v63  ;;  %v1036_v63 = vsel %vm995_vm0, %v1032_v62, 0.0  ;;  %v1033_v0 = vmul.f32 %v4316_v54, %v4316_v54 }
 0x3db   : > { %3182 = vmatpush3.bf16.xpose.msra.mxu0 %v1123_v3  ;;  %v991_v3 = vmul.f32 %v4304_v51, %v4304_v51 }
 0x3dc   : > { %3193 = vmatprep.subr.bf16.mxu0 %v3993_v22  ;;  %v1031_v6 = vpack.c.bf16 %v1029_v5, %v1028_v4  ;;  %v1039_v2 = vsel %vm995_vm0, %v1033_v0, 0.0 }
 0x3e2   : > { %3184 = vmatmul.mubr.msk.bf16.vlgmr.msra.gmra.mxu0 %vm995_vm0, %v1031_v6  ;;  %v996_v6 = vsel %vm995_vm0, %v991_v3, 0.0 }
 0x3e3   : > { %3195 = vmatprep.mubr.msk.bf16.mxu0 %vm3994_vm2, %v3993_v22  ;;  %v3536_v19 = vpop.eup %3535 }
 0x3e4   : > { %v647_v20 = vmul.f32 %v3536_v19, %v4345_v16  ;;  %v4476_v19 = vld [vmem:[%s4250_s24 + $0x2] sm:$0x1] }
 0x3e6   : > { %v649_v21 = vmul.f32 %v647_v20, %v4365_v48  ;;  %v633_v20 = vmul.f32 %v4476_v19, %v4476_v19 }
 0x3e8   : > { %v4417_v24 = vrot.slane %v649_v21, %v4295_v41  ;;  %v636_v21 = vsel %vm635_vm1, %v633_v20, 0.0 }
 0x3ea   : > { %v1181_v27 = vmul.f32 %v4417_v24, %v1029_v5  ;;  %v1180_v32 = vmul.f32 %v4417_v24, %v1028_v4 }
 0x3ec   : > { %v1191_v28 = vsel %vm995_vm0, %v1181_v27, 0.0  ;;  %v1188_v33 = vsel %vm995_vm0, %v1180_v32, 0.0 }
 0x44a   : > { %v4386_v7 = vpop.f32.mrf.mxu0  ;;  %v4388_v8 = vpop.f32.mrf.mxu1 }
 0x44b   : > { %v1507_v30 = vmul.f32 %v4386_v7, %v4386_v7 }
 0x44c   : > { %v4390_v10 = vpop.f32.mrf.mxu0  ;;  %v4392_v11 = vpop.f32.mrf.mxu1 }
 0x44d   : > { %1493 = vrot.lane.b32.xlu1 %v4390_v10, %s3992_s6  ;;  %v1541_v29 = vmul.f32 %v4390_v10, %v4390_v10  ;;  %v1511_v31 = vsel %vm995_vm0, %v1507_v30, 0.0 }
 0x44e   : > { %v4396_v12 = vpop.f32.mrf.mxu0  ;;  %v4398_v13 = vpop.f32.mrf.mxu1 }
 0x44f   : > { %v3392_v15 = vpack.i.bf16 %v4398_v13, %v4388_v8  ;;  %v1743_v17 = vpack.c.bf16 %v4398_v13, %v4388_v8  ;;  %v1545_v16 = vsel %vm995_vm0, %v1541_v29, 0.0  ;;  %v1508_v39 = vmul.f32 %v4396_v12, %v4396_v12 }
 0x450   : > { %v4404_v18 = vpop.f32.mrf.mxu0  ;;  %v4466_v4 = vpop.f32.mrf.mxu1 }
 0x451   : > { %1485 = vrot.lane.b32.xlu1 %v4386_v7, %s3992_s6  ;;  %1495 = vrot.lane.b32.xlu0 %v4404_v18, %s3992_s6  ;;  %v1542_v23 = vmul.f32 %v4404_v18, %v4404_v18  ;;  %v1514_v43 = vsel %vm995_vm0, %v1508_v39, 0.0  ;;  %v3387_v5 = vpack.i.bf16 %v4466_v4, %v4392_v11 }
 0x453   : > { %v1548_v26 = vsel %vm995_vm0, %v1542_v23, 0.0 }
 0x455   : > { %1487 = vrot.lane.b32.xlu1 %v4396_v12, %s3992_s6 }
 0x470   : > { %1549 = vadd.xlane.f32.xlu0 %v1548_v26 }
 0x474   : > { %1192 = vadd.xlane.f32.xlu0 %v1191_v28 }
 0x479   : > { %1546 = vadd.xlane.f32.xlu1 %v1545_v16 }
 0x47d   : > { %1512 = vadd.xlane.f32.xlu1 %v1511_v31 }
 0x481   : > { %1189 = vadd.xlane.f32.xlu1 %v1188_v33 }
 0x4a2   : > { %v4430_v34 = vpop.f32.mrf.mxu0 }
 0x4a3   : > { %v1201_v35 = vsel %vm1194_vm3, %v4430_v34, -inf }
 0x4a4   : > { %v3185_v36 = vpop.f32.mrf.mxu0  ;;  %1202 = vmax.xlane.f32.xlu0 %v1201_v35 }
 0x4a6   : > { %v1162_v37 = vpop.f32.mrf.mxu0 }
 0x4a7   : > { %v1204_v38 = vsel %vm1194_vm3, %v1162_v37, -inf }
 0x4a8   : > { %v3186_v42 = vpop.f32.mrf.mxu0  ;;  %1205 = vmax.xlane.f32.xlu0 %v1204_v38 }
 0x4ac   : > { %1515 = vadd.xlane.f32.xlu0 %v1514_v43 }
 0x4bf   : > { %v4438_v44 = vpop.permute.xlu1 %1493 }
 0x4c0   : > { %v1543_v45 = vmul.f32 %v4438_v44, %v4438_v44 }
 0x4c2   : > { %v1551_v46 = vsel %vm995_vm0, %v1543_v45, 0.0 }
 0x4c3   : > { %v4443_v47 = vpop.permute.xlu1 %1485  ;;  %1552 = vadd.xlane.f32.xlu1 %v1551_v46  ;;  %v4445_v49 = vpop.permute.xlu0 %1495 }
 0x4c4   : > { %v1509_v55 = vmul.f32 %v4443_v47, %v4443_v47  ;;  %v1544_v56 = vmul.f32 %v4445_v49, %v4445_v49 }
 0x4c6   : > { %v1517_v57 = vsel %vm995_vm0, %v1509_v55, 0.0  ;;  %v1554_v58 = vsel %vm995_vm0, %v1544_v56, 0.0 }
 0x4c7   : > { %v4453_v59 = vpop.permute.xlu1 %1487  ;;  %1518 = vadd.xlane.f32.xlu1 %v1517_v57  ;;  %1555 = vadd.xlane.f32.xlu0 %v1554_v58 }
 0x4c8   : > { %v1510_v60 = vmul.f32 %v4453_v59, %v4453_v59 }
 0x4ca   : > { %v1520_v61 = vsel %vm995_vm0, %v1510_v60, 0.0 }
 0x4cb   : > { %1521 = vadd.xlane.f32.xlu0 %v1520_v61 }
 0x4cf   : > { %1037 = vadd.xlane.f32.xlu0 %v1036_v63 }
 0x4d3   : > { %1040 = vadd.xlane.f32.xlu0 %v1039_v2 }
 0x4d7   : > { %997 = vadd.xlane.f32.xlu0 %v996_v6 }
 0x4d8   : > { %3388 = vrot.lane.b32.xlu1 %v3387_v5, %s3992_s6 }
 0x4db   : > { %1000 = vadd.xlane.f32.xlu0 %v999_v14 }
 0x4f9   : > { %v1550_v26 = vpop.xlane.xlu0 %1549 }
 0x4fa   : > { %v1558_v38 = vmax.f32 %v1550_v26, 1e-24 }
 0x4fc   : > { %637 = vadd.xlane.f32.xlu1 %v636_v21 }
 0x4fd   : > { %v4481_v28 = vpop.xlane.xlu0 %1192 }
 0x502   : > { %v1547_v23 = vpop.xlane.xlu1 %1546 }
 0x503   : > { %v1557_v36 = vmax.f32 %v1547_v23, 1e-24 }
 0x505   : > { %3537 = vrsqrt.f32 %v1557_v36 }
 0x506   : > { %v1513_v27 = vpop.xlane.xlu1 %1512  ;;  %3539 = vrsqrt.f32 %v1558_v38 }
 0x507   : > { %v1523_v55 = vmax.f32 %v1513_v27, 1e-24 }
 0x50a   : > { %v4483_v29 = vpop.xlane.xlu1 %1189 }
 0x512   : > { %v3538_v58 = vpop.eup %3537 }
 0x513   : > { %v3540_v61 = vpop.eup %3539  ;;  %v1565_v63 = vmul.f32 %v3538_v58, %v4390_v10 }
 0x515   : > { %v1569_v6 = vmul.f32 %v1565_v63, %v4369_v50 }
 0x52d   : > { %v1203_v16 = vpop.xlane.xlu0 %1202 }
 0x52e   : > { %v4486_v30 = vmax.f32 %v1203_v16, %v4483_v29 }
 0x530   : > { %v1225_v31 = vsub.f32 %v4483_v29, %v4486_v30  ;;  %v1213_v43 = vsub.f32 %v4430_v34, %v4486_v30  ;;  %v1566_v34 = vmul.f32 %v3540_v61, %v4404_v18 }
 0x531   : > { %v1206_v32 = vpop.xlane.xlu0 %1205 }
 0x532   : > { %v4491_v33 = vmax.f32 %v1206_v32, %v4481_v28  ;;  %v1219_v56 = vmul.f32 1.442695, %v1213_v43  ;;  %v1570_v23 = vmul.f32 %v1566_v34, %v4369_v50 }
 0x534   : > { %v1226_v35 = vsub.f32 %v4481_v28, %v4491_v33  ;;  %v1214_v39 = vsub.f32 %v1162_v37, %v4491_v33  ;;  %v1573_v18 = vpack.c.bf16 %v1570_v23, %v1569_v6 }
 0x535   : > { %v1516_v42 = vpop.xlane.xlu0 %1515 }
 0x536   : > { %v1221_v45 = vmul.f32 1.442695, %v1214_v39  ;;  %v1524_v46 = vmax.f32 %v1516_v42, 1e-24 }
 0x538   : > { %3541 = vpow2.f32 %v1221_v45  ;;  %v1579_v45 = vsel %vm995_vm0, %v1573_v18, 0 }
 0x539   : > { %3543 = vrsqrt.f32 %v1524_v46 }
 0x53a   : > { %3545 = vrsqrt.f32 %v1523_v55 }
 0x53b   : > { %3547 = vpow2.f32 %v1219_v56 }
 0x545   : > { %v4501_v21 = vpop.eup %3541 }
 0x546   : > { %v3544_v26 = vpop.eup %3543 }
 0x547   : > { %v3546_v10 = vpop.eup %3545  ;;  %v1532_v38 = vmul.f32 %v3544_v26, %v4396_v12 }
 0x548   : > { %v4504_v32 = vpop.eup %3547  ;;  %v1531_v42 = vmul.f32 %v3546_v10, %v4386_v7 }
 0x549   : > { %v1252_v39 = vpack.c.bf16 %v4501_v21, %v4504_v32  ;;  %v4516_v12 = vmul.f32 %v1532_v38, %v4376_v1 }
 0x54a   : > { %v1535_v7 = vmul.f32 %v1531_v42, %v4376_v1  ;;  %v1253_v42 = vpack.c.bf16 %v4466_v4, %v4392_v11 }
 0x54c   : > { %v1553_v57 = vpop.xlane.xlu1 %1552  ;;  %v1539_v61 = vpack.c.bf16 %v4516_v12, %v1535_v7 }
 0x54d   : > { %v1559_v60 = vmax.f32 %v1553_v57, 1e-24 }
 0x54f   : > { %3549 = vrsqrt.f32 %v1559_v60 }
 0x550   : > { %v1519_v62 = vpop.xlane.xlu1 %1518  ;;  %v1556_v37 = vpop.xlane.xlu0 %1555 }
 0x551   : > { %v1560_v0 = vmax.f32 %v1556_v37, 1e-24  ;;  %v1525_v2 = vmax.f32 %v1519_v62, 1e-24 }
 0x553   : > { %3551 = vrsqrt.f32 %v1560_v0 }
 0x554   : > { %v3389_v3 = vpop.permute.xlu1 %3388  ;;  %v1522_v5 = vpop.xlane.xlu0 %1521 }
 0x555   : > { %v3391_v9 = vunpack.i.h.bf16 %v3389_v3  ;;  %v3390_v14 = vunpack.i.l.bf16 %v3389_v3  ;;  %v1526_v20 = vmax.f32 %v1522_v5, 1e-24 }
 0x557   : > { %v1254_v27 = vpack.c.bf16 %v3391_v9, %v3390_v14  ;;  %3553 = vrsqrt.f32 %v1526_v20 }
 0x558   : > { %3555 = vrsqrt.f32 %v1525_v2  ;;  %v1038_v16 = vpop.xlane.xlu0 %1037 }
 0x559   : > { %v1048_v36 = vmax.f32 %v1038_v16, 1e-24  ;;  %3194 = vmatpush3.bf16.msra.mxu0 %v1254_v27 }
 0x55a   : > { %3219 = vmatprep.subr.bf16.mxu0 %v3993_v22 }
 0x55b   : > { %3557 = vrsqrt.f32 %v1048_v36 }
 0x55c   : > { %3196 = vmatmul.mubr.msk.bf16.vlgmr.msra.gmra.mxu0 %vm1194_vm3, %v1252_v39  ;;  %v1041_v43 = vpop.xlane.xlu0 %1040  ;;  %v3550_v46 = vpop.eup %3549 }
 0x55d   : > { %v1049_v55 = vmax.f32 %v1041_v43, 1e-24  ;;  %3220 = vmatpush3.bf16.xpose.msra.mxu0 %v1579_v45  ;;  %3221 = vmatprep.mubr.msk.bf16.mxu0 %vm3994_vm2, %v3993_v22  ;;  %v1567_v57 = vmul.f32 %v3550_v46, %v4438_v44 }
 0x55e   : > { %3225 = vmatprep.subr.bf16.mxu0 %v3993_v22 }
 0x55f   : > { %3559 = vrsqrt.f32 %v1049_v55  ;;  %v1571_v0 = vmul.f32 %v1567_v57, %v4369_v50 }
 0x560   : > { %v998_v56 = vpop.xlane.xlu0 %997  ;;  %v3552_v58 = vpop.eup %3551 }
 0x561   : > { %v1008_v60 = vmax.f32 %v998_v56, 1e-24  ;;  %v1568_v62 = vmul.f32 %v3552_v58, %v4445_v49 }
 0x563   : > { %3561 = vrsqrt.f32 %v1008_v60  ;;  %v1572_v34 = vmul.f32 %v1568_v62, %v4369_v50 }
 0x564   : > { %v3554_v37 = vpop.eup %3553  ;;  %3222 = vmatmul.mubr.msk.bf16.vlgmr.msra.gmra.mxu0 %vm995_vm0, %v1539_v61  ;;  %v1001_v63 = vpop.xlane.xlu0 %1000 }
 0x565   : > { %v3556_v2 = vpop.eup %3555  ;;  %v1009_v3 = vmax.f32 %v1001_v63, 1e-24  ;;  %3227 = vmatprep.mubr.msk.bf16.mxu0 %vm3994_vm2, %v3993_v22  ;;  %v1534_v44 = vmul.f32 %v3554_v37, %v4453_v59  ;;  %v1574_v5 = vpack.c.bf16 %v1572_v34, %v1571_v0  ;;  %v1233_v37 = vmul.f32 1.442695, %v1226_v35 }
 0x566   : > { %v1533_v49 = vmul.f32 %v3556_v2, %v4443_v47 }
 0x567   : > { %3563 = vrsqrt.f32 %v1009_v3  ;;  %v1626_v9 = vsel %vm995_vm0, %v1574_v5, 0  ;;  %v1538_v14 = vmul.f32 %v1534_v44, %v4376_v1 }
 0x568   : > { %v3558_v6 = vpop.eup %3557  ;;  %3226 = vmatpush3.bf16.xpose.msra.mxu0 %v1626_v9  ;;  %v1537_v26 = vmul.f32 %v1533_v49, %v4376_v1 }
 0x569   : > { %3231 = vmatprep.subr.bf16.mxu0 %v3993_v22  ;;  %v1056_v20 = vmul.f32 %v3558_v6, %v4308_v52 }
 0x56a   : > { %v1540_v59 = vpack.c.bf16 %v1538_v14, %v1537_v26  ;;  %v1671_v60 = vmul.f32 %v1537_v26, %v4417_v24 }
 0x56b   : > { %v1066_v10 = vmul.f32 %v4369_v50, %v1056_v20 }
 0x56c   : > { %v3560_v23 = vpop.eup %3559 }
 0x56d   : > { %v1057_v27 = vmul.f32 %v3560_v23, %v4316_v54 }
 0x56f   : > { %v1067_v16 = vmul.f32 %v4369_v50, %v1057_v27  ;;  %3228 = vmatmul.mubr.msk.bf16.vlgmr.msra.gmra.mxu0 %vm995_vm0, %v1540_v59 }
 0x570   : > { %v3562_v47 = vpop.eup %3561  ;;  %3232 = vmatpush3.bf16.msra.mxu0 %v1743_v17  ;;  %3233 = vmatprep.mubr.msk.bf16.mxu0 %vm3994_vm2, %v3993_v22 }
 0x571   : > { %v1070_v18 = vpack.c.bf16 %v1067_v16, %v1066_v10  ;;  %3237 = vmatprep.subr.bf16.mxu0 %v3993_v22  ;;  %v1016_v52 = vmul.f32 %v3562_v47, %v4304_v51 }
 0x573   : > { %v1076_v54 = vsel %vm995_vm0, %v1070_v18, 0  ;;  %v1026_v38 = vmul.f32 %v4376_v1, %v1016_v52  ;;  %v1241_v52 = vsel %vm1194_vm3, %v4504_v32, 0.0 }
 0x574   : > { %v3564_v36 = vpop.eup %3563  ;;  %3176 = vmatpush3.bf16.xpose.msra.mxu1 %v1076_v54 }
 0x575   : > { %v1017_v50 = vmul.f32 %v3564_v36, %v4312_v53  ;;  %3187 = vmatprep.subr.bf16.mxu1 %v3993_v22  ;;  %v1244_v36 = vsel %vm1194_vm3, %v4501_v21, 0.0 }
 0x577   : > { %v1027_v17 = vmul.f32 %v4376_v1, %v1017_v50 }
 0x579   : > { %v1030_v39 = vpack.c.bf16 %v1027_v17, %v1026_v38 }
 0x57b   : > { %3178 = vmatmul.mubr.msk.bf16.vlgmr.msra.gmra.mxu1 %vm995_vm0, %v1030_v39 }
 0x57c   : > { %3188 = vmatpush3.bf16.msra.mxu1 %v1253_v42  ;;  %3189 = vmatprep.mubr.msk.bf16.mxu1 %vm3994_vm2, %v3993_v22 }
 0x57d   : > { %3199 = vmatprep.subr.bf16.mxu1 %v3993_v22 }
 0x585   : > { %v638_v51 = vpop.xlane.xlu1 %637 }
 0x586   : > { %v642_v53 = vmax.f32 %v638_v51, 1e-24 }
 0x588   : > { %3565 = vrsqrt.f32 %v642_v53 }
 0x595   : > { %v3566_v43 = vpop.eup %3565 }
 0x596   : > { %v646_v45 = vmul.f32 %v3566_v43, %v4476_v19  ;;  %v1672_v19 = vmul.f32 %v1538_v14, %v4417_v24  ;;  %v4578_v24 = vld [vmem:[%s4250_s24 + $0x5] ss:$0 sm:$0xff] }
 0x598   : > { %v648_v1 = vmul.f32 %v646_v45, %v4365_v48  ;;  %v1679_v48 = vsel %vm995_vm0, %v1671_v60, 0.0 }
 0x59a   : > { %v1171_v46 = vrot.slane %v648_v1, %v4295_v41 }
 0x59c   : > { %v1669_v55 = vmul.f32 %v1535_v7, %v1171_v46  ;;  %v1179_v11 = vmul.f32 %v1171_v46, %v1027_v17  ;;  %v1670_v57 = vmul.f32 %v4516_v12, %v1171_v46  ;;  %v1682_v7 = vsel %vm995_vm0, %v1672_v19, 0.0 }
 0x59d   : > { %v1178_v61 = vmul.f32 %v1171_v46, %v1026_v38  ;;  %v1231_v12 = vmul.f32 1.442695, %v1225_v31 }
 0x59e   : > { %v1673_v4 = vsel %vm995_vm0, %v1669_v55, 0.0  ;;  %v1185_v56 = vsel %vm995_vm0, %v1179_v11, 0.0  ;;  %v1676_v58 = vsel %vm995_vm0, %v1670_v57, 0.0 }
 0x59f   : > { %1674 = vadd.xlane.f32.xlu0 %v1673_v4  ;;  %1186 = vadd.xlane.f32.xlu1 %v1185_v56  ;;  %v1182_v62 = vsel %vm995_vm0, %v1178_v61, 0.0  ;;  %3567 = vpow2.f32 %v1231_v12 }
 0x5a0   : > { %3569 = vpow2.f32 %v1233_v37 }
 0x5a3   : > { %1677 = vadd.xlane.f32.xlu0 %v1676_v58 }
 0x5a7   : > { %1680 = vadd.xlane.f32.xlu0 %v1679_v48 }
 0x5ab   : > { %1683 = vadd.xlane.f32.xlu0 %v1682_v7 }
 0x5ac   : > { %v4575_v63 = vpop.eup %3567 }
 0x5ad   : > { %v1269_v0 = vmul.f32 %v4575_v63, %v4578_v24  ;;  %v4582_v34 = vpop.eup %3569 }
 0x5ae   : > { %v1270_v30 = vmul.f32 %v4582_v34, %v4578_v24 }
 0x5af   : > { %1183 = vadd.xlane.f32.xlu0 %v1182_v62 }
 0x61c   : > { %v1352_v2 = vpop.f32.mrf.mxu0 }
 0x61d   : > { %v4584_v3 = vadd.f32 %v1352_v2, %v1269_v0 }
 0x61e   : > { %v3197_v29 = vpop.f32.mrf.mxu0 }
 0x620   : > { %v1355_v31 = vpop.f32.mrf.mxu0 }
 0x621   : > { %v4588_v28 = vadd.f32 %v1355_v31, %v1270_v30 }
 0x622   : > { %v3198_v33 = vpop.f32.mrf.mxu0 }
 0x624   : > { %v1615_v35 = vpop.f32.mrf.mxu0 }
 0x625   : > { %v1685_v10 = vsel %vm1194_vm3, %v1615_v35, -inf }
 0x626   : > { %v3223_v44 = vpop.f32.mrf.mxu0 }
 0x628   : > { %v1618_v5 = vpop.f32.mrf.mxu0  ;;  %v1675_v32 = vpop.xlane.xlu0 %1674 }
 0x629   : > { %v1688_v18 = vsel %vm1194_vm3, %v1618_v5, -inf  ;;  %v4616_v21 = vpop.xlane.xlu1 %1186 }
 0x62a   : > { %v3224_v6 = vpop.f32.mrf.mxu0 }
 0x62c   : > { %v1678_v38 = vpop.xlane.xlu0 %1677 }
 0x62f   : > { %v4590_v49 = vpop.f32.mrf.mxu0 }
 0x630   : > { %v1691_v54 = vsel %vm1194_vm3, %v4590_v49, -inf  ;;  %v4610_v17 = vpop.xlane.xlu0 %1680 }
 0x631   : > { %v3229_v9 = vpop.f32.mrf.mxu0 }
 0x633   : > { %v4592_v14 = vpop.f32.mrf.mxu0 }
 0x634   : > { %v1694_v50 = vsel %vm1194_vm3, %v4592_v14, -inf  ;;  %v4612_v39 = vpop.xlane.xlu0 %1683 }
 0x635   : > { %v3230_v20 = vpop.f32.mrf.mxu0 }
 0x638   : > { %v4614_v42 = vpop.xlane.xlu0 %1183 }
 0x63b   : > { %v1112_v23 = vpop.f32.mrf.mxu1 }
 0x63c   : > { %v1195_v26 = vsel %vm1194_vm3, %v1112_v23, -inf }
 0x63d   : > { %1196 = vmax.xlane.f32.xlu0 %v1195_v26  ;;  %v3179_v27 = vpop.f32.mrf.mxu1 }
 0x63f   : > { %v1115_v59 = vpop.f32.mrf.mxu1 }
 0x640   : > { %v1198_v16 = vsel %vm1194_vm3, %v1115_v59, -inf }
 0x641   : > { %1686 = vmax.xlane.f32.xlu0 %v1685_v10  ;;  %1199 = vmax.xlane.f32.xlu1 %v1198_v16  ;;  %v3180_v47 = vpop.f32.mrf.mxu1  ;;  %v4646_v10 = vld [vmem:[%s4250_s24 + $0x4] ss:$0 sm:$0xff] }
 0x645   : > { %1689 = vmax.xlane.f32.xlu0 %v1688_v18  ;;  %1242 = vadd.xlane.f32.xlu1 %v1241_v52 }
 0x649   : > { %1692 = vmax.xlane.f32.xlu0 %v1691_v54  ;;  %1245 = vadd.xlane.f32.xlu1 %v1244_v36 }
 0x64d   : > { %1695 = vmax.xlane.f32.xlu0 %v1694_v50 }
 0x663   : > { %3393 = vrot.lane.b32.xlu0 %v3392_v15, %s3992_s6 }
 0x6c6   : > { %v1197_v51 = vpop.xlane.xlu0 %1196 }
 0x6c7   : > { %v4619_v53 = vmax.f32 %v1197_v51, %v4614_v42 }
 0x6c9   : > { %v1211_v43 = vsub.f32 %v1112_v23, %v4619_v53  ;;  %v1223_v8 = vsub.f32 %v4614_v42, %v4619_v53 }
 0x6ca   : > { %v1200_v13 = vpop.xlane.xlu1 %1199  ;;  %v1687_v15 = vpop.xlane.xlu0 %1686 }
 0x6cb   : > { %v4625_v45 = vmax.f32 %v1200_v13, %v4616_v21  ;;  %v1697_v1 = vmax.f32 %v1687_v15, %v1675_v32  ;;  %v1215_v46 = vmul.f32 1.442695, %v1211_v43 }
 0x6cd   : > { %v1212_v55 = vsub.f32 %v1115_v59, %v4625_v45  ;;  %v1224_v11 = vsub.f32 %v4616_v21, %v4625_v45  ;;  %v1701_v4 = vsub.f32 %v1615_v35, %v1697_v1  ;;  %v1713_v56 = vsub.f32 %v1675_v32, %v1697_v1 }
 0x6ce   : > { %v1243_v57 = vpop.xlane.xlu1 %1242  ;;  %v1690_v58 = vpop.xlane.xlu0 %1689  ;;  %3571 = vpow2.f32 %v1215_v46 }
 0x6cf   : > { %v1217_v60 = vmul.f32 1.442695, %v1212_v55  ;;  %v1705_v48 = vmul.f32 1.442695, %v1701_v4  ;;  %v1717_v19 = vmul.f32 1.442695, %v1713_v56  ;;  %v1698_v7 = vmax.f32 %v1690_v58, %v1678_v38 }
 0x6d0   : > { %v1249_v61 = vadd.f32 %v4575_v63, %v1243_v57  ;;  %v3439_v4 = vld [vmem:[%s4258_s21 + $0x38] sm:$0xff]   ;;  %v3440_v57 = vld [vmem:[%s4258_s21 + $0x30] sm:$0xff]   ;;  %v3441_v58 = vld [vmem:[%s4258_s21 + $0x28] sm:$0xff]  }
 0x6d1   : > { %3573 = vpow2.f32 %v1217_v60  ;;  %v1702_v62 = vsub.f32 %v1618_v5, %v1698_v7  ;;  %v1714_v12 = vsub.f32 %v1678_v38, %v1698_v7  ;;  %v3442_v60 = vld [vmem:[%s4258_s21 + $0x20] sm:$0xff]   ;;  %v3445_v7 = vld [vmem:[%s4258_s21 + $0x8] sm:$0xff]  }
 0x6d2   : > { %v1246_v37 = vpop.xlane.xlu1 %1245  ;;  %v1693_v0 = vpop.xlane.xlu0 %1692  ;;  %3575 = vpow2.f32 %v1705_v48  ;;  %v3443_v48 = vld [vmem:[%s4258_s21 + $0x18] sm:$0xff]  }
 0x6d3   : > { %v4632_v2 = vmax.f32 %v1693_v0, %v4610_v17  ;;  %3577 = vpow2.f32 %v1717_v19  ;;  %v1707_v29 = vmul.f32 1.442695, %v1702_v62  ;;  %v1719_v30 = vmul.f32 1.442695, %v1714_v12  ;;  %v3444_v19 = vld [vmem:[%s4258_s21 + $0x10] sm:$0xff]  }
 0x6d4   : > { %v1250_v31 = vadd.f32 %v4582_v34, %v1246_v37  ;;  %3579 = vrcp.f32 %v1249_v61  ;;  %v3446_v61 = vld [vmem:[%s4258_s21] sm:$0xff]   ;;  %v1227_v12 = vmul.f32 1.442695, %v1223_v8  ;;  %v1229_v0 = vmul.f32 1.442695, %v1224_v11 }
 0x6d5   : > { %v1703_v33 = vsub.f32 %v4590_v49, %v4632_v2  ;;  %3581 = vpow2.f32 %v1707_v29 }
 0x6d6   : > { %v1696_v35 = vpop.xlane.xlu0 %1695  ;;  %3583 = vpow2.f32 %v1719_v30  ;;  %v1715_v30 = vsub.f32 %v4610_v17, %v4632_v2 }
 0x6d7   : > { %v1709_v63 = vmul.f32 1.442695, %v1703_v33  ;;  %v4638_v44 = vmax.f32 %v1696_v35, %v4612_v39  ;;  %3585 = vrcp.f32 %v1250_v31 }
 0x6d8   : > { %v1721_v35 = vmul.f32 1.442695, %v1715_v30 }
 0x6d9   : > { %3587 = vpow2.f32 %v1709_v63  ;;  %v1704_v5 = vsub.f32 %v4592_v14, %v4638_v44  ;;  %v1716_v31 = vsub.f32 %v4612_v39, %v4638_v44 }
 0x6da   : > { %v3394_v20 = vpop.permute.xlu0 %3393 }
 0x6db   : > { %v1711_v6 = vmul.f32 1.442695, %v1704_v5  ;;  %v3572_v9 = vpop.eup %3571  ;;  %v3396_v27 = vunpack.i.h.bf16 %v3394_v20  ;;  %v3395_v59 = vunpack.i.l.bf16 %v3394_v20  ;;  %v1723_v63 = vmul.f32 1.442695, %v1716_v31  ;;  %v3450_v31 = vld [vmem:[%s4258_s21 + $0x20] sm:$0xff]  }
 0x6dd   : > { %3589 = vpow2.f32 %v1711_v6  ;;  %v1744_v50 = vpack.c.bf16 %v3396_v27, %v3395_v59 }
 0x6de   : > { %v3574_v34 = vpop.eup %3573  ;;  %3591 = vpow2.f32 %v1227_v12 }
 0x6df   : > { %v1251_v23 = vpack.c.bf16 %v3574_v34, %v3572_v9  ;;  %v3576_v49 = vpop.eup %3575  ;;  %v1238_v46 = vsel %vm1194_vm3, %v3574_v34, 0.0  ;;  %3593 = vpow2.f32 %v1229_v0 }
 0x6e0   : > { %v4642_v26 = vpop.eup %3577  ;;  %v1725_v55 = vsel %vm1194_vm3, %v3576_v49, 0.0  ;;  %3595 = vpow2.f32 %v1721_v35  ;;  %v3452_v35 = vld [vmem:[%s4258_s21 + $0x10] sm:$0xff]  }
 0x6e1   : > { %3190 = vmatmul.mubr.msk.bf16.vlgmr.msra.gmra.mxu1 %vm1194_vm3, %v1251_v23  ;;  %v3580_v16 = vpop.eup %3579  ;;  %v4650_v47 = vmul.f32 %v4642_v26, %v4646_v10  ;;  %3597 = vpow2.f32 %v1723_v63  ;;  %v3453_v63 = vld [vmem:[%s4258_s21 + $0x8] sm:$0xff]  }
 0x6e2   : > { %3215 = vmatprep.mubr.msk.bf16.mxu1 %vm3994_vm2, %v3993_v22  ;;  %v3582_v14 = vpop.eup %3581  ;;  %v1365_v18 = vmul.f32 %v3580_v16, %v4584_v3  ;;  %3200 = vmatpush3.bf16.msra.mxu1 %v3439_v4 }
 0x6e3   : > { %v4655_v52 = vpop.eup %3583  ;;  %v1741_v54 = vpack.c.bf16 %v3582_v14, %v3576_v49  ;;  %3201 = vmatprep.subr.bf16.mxu1 %v3993_v22  ;;  %v1728_v56 = vsel %vm1194_vm3, %v3582_v14, 0.0 }
 0x6e4   : > { %v3586_v36 = vpop.eup %3585  ;;  %v4659_v32 = vmul.f32 %v4655_v52, %v4646_v10 }
 0x6e5   : > { %3234 = vmatmul.mubr.msk.bf16.vlgmr.msra.gmra.mxu0 %vm1194_vm3, %v1741_v54  ;;  %v1366_v51 = vmul.f32 %v3586_v36, %v4588_v28  ;;  %v1235_v28 = vsel %vm1194_vm3, %v3572_v9, 0.0 }
 0x6e6   : > { %v3588_v38 = vpop.eup %3587  ;;  %3238 = vmatpush3.bf16.msra.mxu0 %v1744_v50  ;;  %3239 = vmatprep.mubr.msk.bf16.mxu0 %vm3994_vm2, %v3993_v22 }
 0x6e7   : > { %v1731_v43 = vsel %vm1194_vm3, %v3588_v38, 0.0  ;;  %v3397_v3 = vpack.i.bf16 %v1366_v51, %v1365_v18  ;;  %3202 = vmatpush3.bf16.msra.mxu1 %v3440_v57 }
 0x6e8   : > { %1732 = vadd.xlane.f32.xlu1 %v1731_v43  ;;  %3203 = vmatprep.subr.bf16.mxu1 %v3993_v22 }
 0x6e9   : > { %3398 = vrot.lane.b32.xlu0 %v3397_v3, %s3992_s6 }
 0x6ea   : > { %v3590_v13 = vpop.eup %3589 }
 0x6eb   : > { %v1734_v15 = vsel %vm1194_vm3, %v3590_v13, 0.0  ;;  %v1742_v1 = vpack.c.bf16 %v3590_v13, %v3588_v38  ;;  %3204 = vmatpush3.bf16.msra.mxu1 %v3441_v58  ;;  %v3592_v5 = vpop.eup %3591  ;;  %v3448_v58 = vld [vmem:[%s4258_s21 + $0x30] sm:$0xff]  }
 0x6ec   : > { %1735 = vadd.xlane.f32.xlu1 %v1734_v15  ;;  %3205 = vmatprep.subr.bf16.mxu1 %v3993_v22  ;;  %v3594_v6 = vpop.eup %3593  ;;  %v1267_v39 = vmul.f32 %v3592_v5, %v4646_v10 }
 0x6ed   : > { %3240 = vmatmul.mubr.msk.bf16.vlgmr.msra.gmra.mxu0 %vm1194_vm3, %v1742_v1  ;;  %v3596_v2 = vpop.eup %3595  ;;  %v1268_v27 = vmul.f32 %v3594_v6, %v4646_v10 }
 0x6ee   : > { %2243 = vmatprep.mubr.bf16.mxu0 %v3991_v25  ;;  %v3598_v9 = vpop.eup %3597 }
 0x6ef   : > { %3206 = vmatpush3.bf16.msra.mxu1 %v3442_v60  ;;  %v1747_v60 = vmul.f32 %v3596_v2, %v4578_v24 }
 0x6f0   : > { %1236 = vadd.xlane.f32.xlu1 %v1235_v28  ;;  %3207 = vmatprep.subr.bf16.mxu1 %v3993_v22  ;;  %v3447_v28 = vld [vmem:[%s4258_s21 + $0x38] sm:$0xff]  }
 0x6f3   : > { %3208 = vmatpush3.bf16.msra.mxu1 %v3443_v48 }
 0x6f4   : > { %1239 = vadd.xlane.f32.xlu1 %v1238_v46  ;;  %3209 = vmatprep.subr.bf16.mxu1 %v3993_v22 }
 0x6f7   : > { %3210 = vmatpush3.bf16.msra.mxu1 %v3444_v19 }
 0x6f8   : > { %1726 = vadd.xlane.f32.xlu1 %v1725_v55  ;;  %3211 = vmatprep.subr.bf16.mxu1 %v3993_v22 }
 0x6fb   : > { %3212 = vmatpush3.bf16.msra.mxu1 %v3445_v7 }
 0x6fc   : > { %3213 = vmatprep.subr.bf16.mxu1 %v3993_v22 }
 0x6ff   : > { %3214 = vmatpush3.bf16.msra.mxu1 %v3446_v61  ;;  %v3449_v61 = vld [vmem:[%s4258_s21 + $0x28] sm:$0xff]  }
 0x700   : > { %3243 = vmatprep.subr.bf16.mxu1 %v3993_v22 }
 0x708   : > { %1729 = vadd.xlane.f32.xlu0 %v1728_v56 }
 0x75b   : > { %v3399_v42 = vpop.permute.xlu0 %3398 }
 0x75c   : > { %v3401_v38 = vunpack.i.h.bf16 %v3399_v42  ;;  %v3400_v51 = vunpack.i.l.bf16 %v3399_v42 }
 0x771   : > { %v1733_v62 = vpop.xlane.xlu1 %1732 }
 0x772   : > { %v1739_v34 = vadd.f32 %v3596_v2, %v1733_v62 }
 0x775   : > { %v1736_v37 = vpop.xlane.xlu1 %1735 }
 0x776   : > { %v1740_v23 = vadd.f32 %v3598_v9, %v1736_v37 }
 0x779   : > { %v1237_v29 = vpop.xlane.xlu1 %1236 }
 0x77a   : > { %v1247_v53 = vadd.f32 %v3592_v5, %v1237_v29  ;;  %v3454_v5 = vld [vmem:[%s4258_s21] sm:$0xff]  }
 0x77c   : > { %3599 = vrcp.f32 %v1247_v53 }
 0x77d   : > { %v1240_v33 = vpop.xlane.xlu1 %1239 }
 0x77e   : > { %v1248_v21 = vadd.f32 %v3594_v6, %v1240_v33 }
 0x780   : > { %3601 = vrcp.f32 %v1248_v21 }
 0x781   : > { %v1727_v8 = vpop.xlane.xlu1 %1726 }
 0x782   : > { %v1737_v45 = vadd.f32 %v4642_v26, %v1727_v8 }
 0x784   : > { %3603 = vrcp.f32 %v1737_v45 }
 0x789   : > { %v3600_v59 = vpop.eup %3599 }
 0x791   : > { %v1730_v11 = vpop.xlane.xlu0 %1729 }
 0x792   : > { %v1738_v17 = vadd.f32 %v4655_v52, %v1730_v11  ;;  %v3602_v52 = vpop.eup %3601 }
 0x793   : > { %v3604_v50 = vpop.eup %3603 }
 0x794   : > { %3605 = vrcp.f32 %v1738_v17  ;;  %v3643_v17 = vld [vmem:[#allocation2 + $0x10] sm:$0xff] }
 0x795   : > { %3607 = vrcp.f32 %v1739_v34 }
 0x796   : > { %3609 = vrcp.f32 %v1740_v23  ;;  %v3645_v23 = vld [vmem:[#allocation2 + $0x18] sm:$0xff] }
 0x7a1   : > { %v1308_v44 = vpop.f32.mrf.mxu1  ;;  %v3606_v4 = vpop.eup %3605 }
 0x7a2   : > { %v1309_v20 = vadd.f32 %v1308_v44, %v1267_v39  ;;  %v3608_v62 = vpop.eup %3607  ;;  %v3644_v44 = vld [vmem:[#allocation2] sm:$0xff] }
 0x7a3   : > { %v3191_v49 = vpop.f32.mrf.mxu1  ;;  %v3610_v37 = vpop.eup %3609 }
 0x7a4   : > { %v1363_v16 = vmul.f32 %v3600_v59, %v1309_v20 }
 0x7a5   : > { %v1311_v26 = vpop.f32.mrf.mxu1  ;;  %v1786_v18 = vpop.f32.mrf.mxu0 }
 0x7a6   : > { %v1312_v14 = vadd.f32 %v1311_v26, %v1268_v27  ;;  %v1787_v54 = vadd.f32 %v1786_v18, %v4650_v47  ;;  %v1375_v10 = vsel %vm995_vm0, %v1363_v16, %v3400_v51  ;;  %v3646_v26 = vld [vmem:[#allocation2 + $0x8] sm:$0xff] }
 0x7a7   : > { %v3192_v36 = vpop.f32.mrf.mxu1  ;;  %v3235_v3 = vpop.f32.mrf.mxu0 }
 0x7a8   : > { %v1364_v43 = vmul.f32 %v3602_v52, %v1312_v14  ;;  %v1841_v13 = vmul.f32 %v3604_v50, %v1787_v54  ;;  %v3455_v3 = vld [vmem:[%s4260_s16 + $0xe0] ss:$16 sps:$4 sm:$0xff]  }
 0x7a9   : > { %v1789_v1 = vpop.f32.mrf.mxu0 }
 0x7aa   : > { %v1376_v15 = vsel %vm995_vm0, %v1364_v43, %v3401_v38  ;;  %v1790_v46 = vadd.f32 %v1789_v1, %v4659_v32  ;;  %v1748_v32 = vmul.f32 %v3598_v9, %v4578_v24  ;;  %v3451_v24 = vld [vmem:[%s4258_s21 + $0x18] sm:$0xff]   ;;  %v3463_v1 = vld [vmem:[%s4260_s16 + $0xc4] ss:$16 sps:$4 sm:$0xff]  }
 0x7ab   : > { %v1377_v55 = vpack.c.bf16 %v1376_v15, %v1375_v10  ;;  %v3236_v47 = vpop.f32.mrf.mxu0  ;;  %v3458_v10 = vld [vmem:[%s4260_s16 + $0xe8] ss:$16 sps:$4 sm:$0xff]   ;;  %v3460_v15 = vld [vmem:[%s4260_s16 + $0xec] ss:$16 sps:$4 sm:$0xff]  }
 0x7ac   : > { %v1842_v56 = vmul.f32 %v3606_v4, %v1790_v46  ;;  %v3461_v46 = vld [vmem:[%s4260_s16 + $0xc0] ss:$16 sps:$4 sm:$0xff]   ;;  %v3469_v4 = vld [vmem:[%s4260_s16 + $0xa4] ss:$16 sps:$4 sm:$0xff]   ;;  %v3472_v47 = vld [vmem:[%s4260_s16 + $0xac] ss:$16 sps:$4 sm:$0xff]  }
 0x7ad   : > { %3216 = vmatmul.mubr.bf16.vlgmr.msra.gmra.mxu1 %v1377_v55  ;;  %v1830_v57 = vpop.f32.mrf.mxu0  ;;  %v3464_v55 = vld [vmem:[%s4260_s16 + $0xc8] ss:$16 sps:$4 sm:$0xff]  }
 0x7ae   : > { %3244 = vmatpush3.bf16.msra.mxu1 %v3447_v28  ;;  %3259 = vmatprep.mubr.msk.bf16.mxu1 %vm3994_vm2, %v3993_v22  ;;  %v1831_v19 = vadd.f32 %v1830_v57, %v1747_v60  ;;  %v3466_v28 = vld [vmem:[%s4260_s16 + $0xcc] ss:$16 sps:$4 sm:$0xff]   ;;  %v3470_v57 = vld [vmem:[%s4260_s16 + $0xa8] ss:$16 sps:$4 sm:$0xff]   ;;  %v3473_v60 = vld [vmem:[%s4260_s16 + $0x80] ss:$16 sps:$4 sm:$0xff]  }
 0x7af   : > { %3245 = vmatprep.subr.bf16.mxu1 %v3993_v22  ;;  %v3241_v48 = vpop.f32.mrf.mxu0 }
 0x7b0   : > { %v1843_v29 = vmul.f32 %v3608_v62, %v1831_v19  ;;  %v3476_v48 = vld [vmem:[%s4260_s16 + $0x88] ss:$16 sps:$4 sm:$0xff]   ;;  %v3478_v19 = vld [vmem:[%s4260_s16 + $0x8c] ss:$16 sps:$4 sm:$0xff]  }
 0x7b1   : > { %v1833_v7 = vpop.f32.mrf.mxu0  ;;  %v3482_v62 = vld [vmem:[%s4260_s16 + $0x68] ss:$16 sps:$4 sm:$0xff]  }
 0x7b2   : > { %3246 = vmatpush3.bf16.msra.mxu1 %v3448_v58  ;;  %v1834_v12 = vadd.f32 %v1833_v7, %v1748_v32  ;;  %v3475_v58 = vld [vmem:[%s4260_s16 + $0x84] ss:$16 sps:$4 sm:$0xff]   ;;  %v3484_v7 = vld [vmem:[%s4260_s16 + $0x6c] ss:$16 sps:$4 sm:$0xff]  }
 0x7b3   : > { %3247 = vmatprep.subr.bf16.mxu1 %v3993_v22  ;;  %v3242_v0 = vpop.f32.mrf.mxu0  ;;  %v3481_v32 = vld [vmem:[%s4260_s16 + $0x64] ss:$16 sps:$4 sm:$0xff]  }
 0x7b4   : > { %v1844_v30 = vmul.f32 %v3610_v37, %v1834_v12  ;;  %v3487_v12 = vld [vmem:[%s4260_s16 + $0x44] ss:$16 sps:$4 sm:$0xff]   ;;  %v3490_v37 = vld [vmem:[%s4260_s16 + $0x4c] ss:$16 sps:$4 sm:$0xff]   ;;  %v3485_v0 = vld [vmem:[%s4260_s16 + $0x40] ss:$16 sps:$4 sm:$0xff]  }
 0x7b6   : > { %3248 = vmatpush3.bf16.msra.mxu1 %v3449_v61  ;;  %v3402_v33 = vpack.i.bf16 %v1844_v30, %v1843_v29  ;;  %v3479_v61 = vld [vmem:[%s4260_s16 + $0x60] ss:$16 sps:$4 sm:$0xff]   ;;  %v3488_v29 = vld [vmem:[%s4260_s16 + $0x48] ss:$16 sps:$4 sm:$0xff]   ;;  %v3493_v30 = vld [vmem:[%s4260_s16 + $0x24] ss:$16 sps:$4 sm:$0xff]  }
 0x7b7   : > { %3249 = vmatprep.subr.bf16.mxu1 %v3993_v22 }
 0x7b8   : > { %3403 = vrot.lane.b32.xlu1 %v3402_v33, %s3992_s6  ;;  %v3491_v33 = vld [vmem:[%s4260_s16 + $0x20] ss:$16 sps:$4 sm:$0xff]  }
 0x7ba   : > { %3250 = vmatpush3.bf16.msra.mxu1 %v3450_v31  ;;  %v3496_v31 = vld [vmem:[%s4260_s16 + $0x2c] ss:$16 sps:$4 sm:$0xff]  }
 0x7bb   : > { %3251 = vmatprep.subr.bf16.mxu1 %v3993_v22 }
 0x7be   : > { %3252 = vmatpush3.bf16.msra.mxu1 %v3451_v24  ;;  %v3494_v24 = vld [vmem:[%s4260_s16 + $0x28] ss:$16 sps:$4 sm:$0xff]  }
 0x7bf   : > { %3253 = vmatprep.subr.bf16.mxu1 %v3993_v22 }
 0x7c2   : > { %3254 = vmatpush3.bf16.msra.mxu1 %v3452_v35  ;;  %v3499_v35 = vld [vmem:[%s4260_s16 + $0x4] ss:$16 sps:$4 sm:$0xff]  }
 0x7c3   : > { %3255 = vmatprep.subr.bf16.mxu1 %v3993_v22 }
 0x7c6   : > { %3256 = vmatpush3.bf16.msra.mxu1 %v3453_v63  ;;  %v3502_v63 = vld [vmem:[%s4260_s16 + $0xc] ss:$16 sps:$4 sm:$0xff]  }
 0x7c7   : > { %3257 = vmatprep.subr.bf16.mxu1 %v3993_v22 }
 0x7ca   : > { %3258 = vmatpush3.bf16.msra.mxu1 %v3454_v5  ;;  %v3497_v5 = vld [vmem:[%s4260_s16] ss:$16 sps:$4 sm:$0xff]  }
 0x7cb   : > { %2264 = vmatprep.subr.bf16.mxu1 %v3460_v15 }
 0x82a   : > { %v3404_v42 = vpop.permute.xlu1 %3403 }
 0x82b   : > { %v3406_v53 = vunpack.i.h.bf16 %v3404_v42  ;;  %v3405_v8 = vunpack.i.l.bf16 %v3404_v42  ;;  %v3500_v42 = vld [vmem:[%s4260_s16 + $0x8] ss:$16 sps:$4 sm:$0xff]  }
 0x82d   : > { %v1854_v6 = vsel %vm995_vm0, %v1842_v56, %v3406_v53  ;;  %v1853_v21 = vsel %vm995_vm0, %v1841_v13, %v3405_v8  ;;  %v3457_v13 = vld [vmem:[%s4260_s16 + $0xe4] ss:$16 sps:$4 sm:$0xff]   ;;  %v3467_v56 = vld [vmem:[%s4260_s16 + $0xa0] ss:$16 sps:$4 sm:$0xff]  }
 0x82e   : > { %v1855_v45 = vpack.c.bf16 %v1854_v6, %v1853_v21  ;;  %2211 = vmatprep.subr.bf16.mxu0 %v3457_v13 }
 0x82f   : > { %2212 = vmatpush1.bf16.msra.mxu0 %v3455_v3 }
 0x830   : > { %3260 = vmatmul.mubr.bf16.vlgmr.msra.gmra.mxu1 %v1855_v45  ;;  %2213 = vmatprep.subr.bf16.mxu0 %v3463_v1 }
 0x831   : > { %2296 = vmatprep.mubr.bf16.mxu1 %v3991_v25  ;;  %2265 = vmatpush1.bf16.msra.mxu1 %v3458_v10 }
 0x832   : > { %2266 = vmatprep.subr.bf16.mxu1 %v3466_v28 }
 0x833   : > { %2214 = vmatpush1.bf16.msra.mxu0 %v3461_v46 }
 0x834   : > { %2215 = vmatprep.subr.bf16.mxu0 %v3469_v4 }
 0x835   : > { %2267 = vmatpush1.bf16.msra.mxu1 %v3464_v55 }
 0x836   : > { %2268 = vmatprep.subr.bf16.mxu1 %v3472_v47 }
 0x837   : > { %2216 = vmatpush1.bf16.msra.mxu0 %v3467_v56 }
 0x838   : > { %2217 = vmatprep.subr.bf16.mxu0 %v3475_v58 }
 0x839   : > { %2269 = vmatpush1.bf16.msra.mxu1 %v3470_v57 }
 0x83a   : > { %2270 = vmatprep.subr.bf16.mxu1 %v3478_v19 }
 0x83b   : > { %2218 = vmatpush1.bf16.msra.mxu0 %v3473_v60 }
 0x83c   : > { %2219 = vmatprep.subr.bf16.mxu0 %v3481_v32 }
 0x83d   : > { %2271 = vmatpush1.bf16.msra.mxu1 %v3476_v48 }
 0x83e   : > { %2272 = vmatprep.subr.bf16.mxu1 %v3484_v7 }
 0x83f   : > { %2220 = vmatpush1.bf16.msra.mxu0 %v3479_v61 }
 0x840   : > { %2221 = vmatprep.subr.bf16.mxu0 %v3487_v12 }
 0x841   : > { %2273 = vmatpush1.bf16.msra.mxu1 %v3482_v62 }
 0x842   : > { %2274 = vmatprep.subr.bf16.mxu1 %v3490_v37 }
 0x843   : > { %2222 = vmatpush1.bf16.msra.mxu0 %v3485_v0 }
 0x844   : > { %2223 = vmatprep.subr.bf16.mxu0 %v3493_v30 }
 0x845   : > { %2275 = vmatpush1.bf16.msra.mxu1 %v3488_v29 }
 0x846   : > { %2276 = vmatprep.subr.bf16.mxu1 %v3496_v31 }
 0x847   : > { %2224 = vmatpush1.bf16.msra.mxu0 %v3491_v33 }
 0x848   : > { %2225 = vmatprep.subr.bf16.mxu0 %v3499_v35 }
 0x849   : > { %2277 = vmatpush1.bf16.msra.mxu1 %v3494_v24 }
 0x84a   : > { %2278 = vmatprep.subr.bf16.mxu1 %v3502_v63 }
 0x84b   : > { %2226 = vmatpush1.bf16.msra.mxu0 %v3497_v5 }
 0x84d   : > { %2279 = vmatpush1.bf16.msra.mxu1 %v3500_v42 }
 0x86d   : > { %v1476_v11 = vpop.f32.mrf.mxu1 }
 0x86e   : > { %v4731_v39 = vadd.f32 %v3643_v17, %v1476_v11 }
 0x86f   : > { %v3217_v2 = vpop.f32.mrf.mxu1 }
 0x870   : > { %1965 = vadd.xlane.f32.xlu1 %v4731_v39 }
 0x871   : > { %v1479_v22 = vpop.f32.mrf.mxu1 }
 0x872   : > { %v4734_v9 = vadd.f32 %v3644_v44, %v1479_v22 }
 0x873   : > { %v3218_v34 = vpop.f32.mrf.mxu1 }
 0x874   : > { %1967 = vadd.xlane.f32.xlu0 %v4734_v9 }
 0x8f0   : > { %v1954_v20 = vpop.f32.mrf.mxu1 }
 0x8f1   : > { %v4737_v49 = vadd.f32 %v3645_v23, %v1954_v20 }
 0x8f2   : > { %v3261_v27 = vpop.f32.mrf.mxu1 }
 0x8f3   : > { %1969 = vadd.xlane.f32.xlu0 %v4737_v49 }
 0x8f4   : > { %v1957_v59 = vpop.f32.mrf.mxu1 }
 0x8f5   : > { %v4740_v16 = vadd.f32 %v3646_v26, %v1957_v59  ;;  %v2011_v59 = vsub.s32 1, %v4292_v40 }
 0x8f6   : > { %v3262_v14 = vpop.f32.mrf.mxu1 }
 0x8f7   : > { %1971 = vadd.xlane.f32.xlu0 %v4740_v16  ;;  %v3647_v14 = vld [vmem:[%s4244_s15] sm:$0x3] }
 0x8f9   : > { %v1966_v18 = vpop.xlane.xlu1 %1965 }
 0x8fa   : > { %v1973_v52 = vmul.f32 0.0078125, %v1966_v18  ;;  %v2012_v18 = vrot.slane %v3647_v14, %v2011_v59 }
 0x8fc   : > { %v4744_v54 = vsub.f32 %v4731_v39, %v1973_v52 }
 0x8fd   : > { %v1968_v36 = vpop.xlane.xlu0 %1967 }
 0x8fe   : > { %v1974_v50 = vmul.f32 0.0078125, %v1968_v36  ;;  %v1981_v38 = vmul.f32 %v4744_v54, %v4744_v54 }
 0x900   : > { %v4749_v51 = vsub.f32 %v4734_v9, %v1974_v50  ;;  %1985 = vadd.xlane.f32.xlu0 %v1981_v38 }
 0x902   : > { %v1982_v43 = vmul.f32 %v4749_v51, %v4749_v51 }
 0x904   : > { %1987 = vadd.xlane.f32.xlu0 %v1982_v43 }
 0x97c   : > { %v1970_v53 = vpop.xlane.xlu0 %1969 }
 0x97d   : > { %v1975_v8 = vmul.f32 0.0078125, %v1970_v53 }
 0x97f   : > { %v1979_v6 = vsub.f32 %v4737_v49, %v1975_v8 }
 0x980   : > { %v1972_v21 = vpop.xlane.xlu0 %1971 }
 0x981   : > { %v1976_v45 = vmul.f32 0.0078125, %v1972_v21  ;;  %v1983_v11 = vmul.f32 %v1979_v6, %v1979_v6 }
 0x983   : > { %v1980_v17 = vsub.f32 %v4740_v16, %v1976_v45  ;;  %1989 = vadd.xlane.f32.xlu0 %v1983_v11 }
 0x985   : > { %v1984_v2 = vmul.f32 %v1980_v17, %v1980_v17 }
 0x987   : > { %1991 = vadd.xlane.f32.xlu0 %v1984_v2 }
 0x989   : > { %v1986_v22 = vpop.xlane.xlu0 %1985 }
 0x98a   : > { %v1993_v44 = vmul.f32 0.0078125, %v1986_v22 }
 0x98c   : > { %v1997_v34 = vadd.f32 1e-05, %v1993_v44 }
 0x98d   : > { %v1988_v20 = vpop.xlane.xlu0 %1987 }
 0x98e   : > { %3611 = vrsqrt.f32 %v1997_v34  ;;  %v1994_v23 = vmul.f32 0.0078125, %v1988_v20 }
 0x990   : > { %v1998_v27 = vadd.f32 1e-05, %v1994_v23 }
 0x992   : > { %3613 = vrsqrt.f32 %v1998_v27 }
 0x99b   : > { %v3612_v26 = vpop.eup %3611 }
 0x99c   : > { %v2005_v52 = vmul.f32 %v3612_v26, %v4744_v54 }
 0x99e   : > { %v2013_v38 = vmul.f32 %v2012_v18, %v2005_v52 }
 0x99f   : > { %v3614_v36 = vpop.eup %3613 }
 0x9a0   : > { %v2006_v50 = vmul.f32 %v3614_v36, %v4749_v51 }
 0x9a2   : > { %v2014_v43 = vmul.f32 %v2012_v18, %v2006_v50 }
 0x9a4   : > { %v2017_v3 = vpack.c.bf16 %v2014_v43, %v2013_v38 }
 0x9a6   : > { %2244 = vmatmul.mubr.bf16.vlgmr.msra.gmra.mxu0 %v2017_v3  ;;  %2297 = vmatmul.mubr.bf16.vlgmr.msra.gmra.mxu1 %v2017_v3 }
 0x9a7   : > { %2253 = vmatprep.mubr.bf16.mxu0 %v3991_v25  ;;  %2306 = vmatprep.mubr.bf16.mxu1 %v3991_v25 }
 0xa0c   : > { %v1990_v13 = vpop.xlane.xlu0 %1989 }
 0xa0d   : > { %v1995_v10 = vmul.f32 0.0078125, %v1990_v13 }
 0xa0f   : > { %v1999_v15 = vadd.f32 1e-05, %v1995_v10 }
 0xa10   : > { %v1992_v1 = vpop.xlane.xlu0 %1991 }
 0xa11   : > { %3615 = vrsqrt.f32 %v1999_v15  ;;  %v1996_v28 = vmul.f32 0.0078125, %v1992_v1 }
 0xa13   : > { %v2000_v46 = vadd.f32 1e-05, %v1996_v28 }
 0xa15   : > { %3617 = vrsqrt.f32 %v2000_v46 }
 0xa1e   : > { %v3616_v54 = vpop.eup %3615 }
 0xa1f   : > { %v2007_v55 = vmul.f32 %v3616_v54, %v1979_v6 }
 0xa21   : > { %v2015_v47 = vmul.f32 %v2012_v18, %v2007_v55 }
 0xa22   : > { %v3618_v51 = vpop.eup %3617 }
 0xa23   : > { %v2008_v4 = vmul.f32 %v3618_v51, %v1980_v17 }
 0xa25   : > { %v2016_v56 = vmul.f32 %v2012_v18, %v2008_v4 }
 0xa27   : > { %v2018_v57 = vpack.c.bf16 %v2016_v56, %v2015_v47 }
 0xa29   : > { %2254 = vmatmul.mubr.bf16.gmra.mxu0 %v2018_v57  ;;  %2307 = vmatmul.mubr.bf16.gmra.mxu1 %v2018_v57 }
 0xa66   : > { %v2245_v58 = vpop.f32.mrf.mxu0  ;;  %v2298_v21 = vpop.f32.mrf.mxu1 }
 0xa67   : > { %v2325_v60 = vmul.f32 0.044715, %v2245_v58  ;;  %v2317_v11 = vmul.f32 0.5, %v2245_v58 }
 0xa68   : > { %v2247_v25 = vpop.f32.mrf.mxu0  ;;  %v2300_v22 = vpop.f32.mrf.mxu1 }
 0xa69   : > { %v2333_v48 = vmul.f32 %v2325_v60, %v2245_v58  ;;  %v2326_v19 = vmul.f32 0.044715, %v2247_v25  ;;  %v2318_v34 = vmul.f32 0.5, %v2247_v25 }
 0xa6a   : > { %v2249_v32 = vpop.f32.mrf.mxu0  ;;  %v2302_v52 = vpop.f32.mrf.mxu1 }
 0xa6b   : > { %v2341_v7 = vmul.f32 %v2333_v48, %v2245_v58  ;;  %v2334_v61 = vmul.f32 %v2326_v19, %v2247_v25  ;;  %v2327_v62 = vmul.f32 0.044715, %v2249_v32  ;;  %v2319_v26 = vmul.f32 0.5, %v2249_v32 }
 0xa6c   : > { %v2251_v12 = vpop.f32.mrf.mxu0  ;;  %v2304_v15 = vpop.f32.mrf.mxu1 }
 0xa6d   : > { %v2349_v37 = vadd.f32 %v2341_v7, %v2245_v58  ;;  %v2342_v0 = vmul.f32 %v2334_v61, %v2247_v25  ;;  %v2335_v29 = vmul.f32 %v2327_v62, %v2249_v32  ;;  %v2328_v30 = vmul.f32 0.044715, %v2251_v12 }
 0xa6e   : > { %v2320_v36 = vmul.f32 0.5, %v2251_v12 }
 0xa6f   : > { %v2357_v31 = vmul.f32 0.7978846, %v2349_v37  ;;  %v2350_v33 = vadd.f32 %v2342_v0, %v2247_v25  ;;  %v2343_v24 = vmul.f32 %v2335_v29, %v2249_v32  ;;  %v2336_v35 = vmul.f32 %v2328_v30, %v2251_v12 }
 0xa71   : > { %3619 = vtanh.f32 %v2357_v31  ;;  %v2358_v63 = vmul.f32 0.7978846, %v2350_v33  ;;  %v2351_v5 = vadd.f32 %v2343_v24, %v2249_v32  ;;  %v2344_v42 = vmul.f32 %v2336_v35, %v2251_v12 }
 0xa73   : > { %3621 = vtanh.f32 %v2358_v63  ;;  %v2359_v53 = vmul.f32 0.7978846, %v2351_v5  ;;  %v2352_v8 = vadd.f32 %v2344_v42, %v2251_v12 }
 0xa75   : > { %3623 = vtanh.f32 %v2359_v53  ;;  %v2360_v6 = vmul.f32 0.7978846, %v2352_v8 }
 0xa77   : > { %3625 = vtanh.f32 %v2360_v6 }
 0xa7e   : > { %v3620_v45 = vpop.eup %3619 }
 0xa7f   : > { %v2373_v17 = vadd.f32 1.0, %v3620_v45 }
 0xa80   : > { %v3622_v2 = vpop.eup %3621 }
 0xa81   : > { %v2381_v44 = vmul.f32 %v2373_v17, %v2317_v11  ;;  %v2374_v20 = vadd.f32 1.0, %v3622_v2 }
 0xa82   : > { %v3624_v23 = vpop.eup %3623 }
 0xa83   : > { %v2382_v27 = vmul.f32 %v2374_v20, %v2318_v34  ;;  %v2375_v14 = vadd.f32 1.0, %v3624_v23  ;;  %v4795_v50 = vmul.f32 %v2381_v44, %v2298_v21 }
 0xa84   : > { %v3626_v18 = vpop.eup %3625 }
 0xa85   : > { %v4797_v38 = vmul.f32 %v2382_v27, %v2300_v22  ;;  %v2383_v43 = vmul.f32 %v2375_v14, %v2319_v26  ;;  %v2376_v3 = vadd.f32 1.0, %v3626_v18 }
 0xa87   : > { %v2384_v13 = vmul.f32 %v2376_v3, %v2320_v36  ;;  %v2398_v10 = vadd.f32 %v4797_v38, %v4795_v50  ;;  %v4801_v1 = vmul.f32 %v2383_v43, %v2302_v52 }
 0xa89   : > { %v4803_v28 = vmul.f32 %v2384_v13, %v2304_v15  ;;  %2399 = vadd.xlane.f32.xlu1 %v2398_v10 }
 0xa8b   : > { %v2401_v46 = vadd.f32 %v4803_v28, %v4801_v1 }
 0xa8d   : > { %2402 = vadd.xlane.f32.xlu0 %v2401_v46 }
 0xae9   : > { %v2255_v54 = vpop.f32.mrf.mxu0  ;;  %v2308_v35 = vpop.f32.mrf.mxu1 }
 0xaea   : > { %v2329_v55 = vmul.f32 0.044715, %v2255_v54  ;;  %v2321_v5 = vmul.f32 0.5, %v2255_v54 }
 0xaeb   : > { %v2257_v51 = vpop.f32.mrf.mxu0  ;;  %v2310_v8 = vpop.f32.mrf.mxu1 }
 0xaec   : > { %v2337_v4 = vmul.f32 %v2329_v55, %v2255_v54  ;;  %v2330_v47 = vmul.f32 0.044715, %v2257_v51  ;;  %v2322_v21 = vmul.f32 0.5, %v2257_v51 }
 0xaed   : > { %v2259_v56 = vpop.f32.mrf.mxu0  ;;  %v2312_v34 = vpop.f32.mrf.mxu1 }
 0xaee   : > { %v2345_v57 = vmul.f32 %v2337_v4, %v2255_v54  ;;  %v2338_v58 = vmul.f32 %v2330_v47, %v2257_v51  ;;  %v2331_v60 = vmul.f32 0.044715, %v2259_v56  ;;  %v2323_v2 = vmul.f32 0.5, %v2259_v56 }
 0xaef   : > { %v2261_v25 = vpop.f32.mrf.mxu0  ;;  %v2314_v36 = vpop.f32.mrf.mxu1 }
 0xaf0   : > { %v2353_v48 = vadd.f32 %v2345_v57, %v2255_v54  ;;  %v2346_v19 = vmul.f32 %v2338_v58, %v2257_v51  ;;  %v2339_v32 = vmul.f32 %v2331_v60, %v2259_v56  ;;  %v2332_v7 = vmul.f32 0.044715, %v2261_v25 }
 0xaf1   : > { %v2324_v20 = vmul.f32 0.5, %v2261_v25 }
 0xaf2   : > { %v2361_v61 = vmul.f32 0.7978846, %v2353_v48  ;;  %v2354_v62 = vadd.f32 %v2346_v19, %v2257_v51  ;;  %v2347_v12 = vmul.f32 %v2339_v32, %v2259_v56  ;;  %v2340_v37 = vmul.f32 %v2332_v7, %v2261_v25  ;;  %v3506_v48 = vld [vmem:[%s4268_s25 + $0x30] sm:$0xff]   ;;  %v3507_v19 = vld [vmem:[%s4268_s25 + $0x68] sm:$0xff]   ;;  %v3509_v7 = vld [vmem:[%s4268_s25 + $0x60] sm:$0xff]  }
 0xaf3   : > { %v3508_v32 = vld [vmem:[%s4268_s25 + $0x28] sm:$0xff]  }
 0xaf4   : > { %3627 = vtanh.f32 %v2361_v61  ;;  %v2362_v0 = vmul.f32 0.7978846, %v2354_v62  ;;  %v2355_v29 = vadd.f32 %v2347_v12, %v2259_v56  ;;  %v2348_v30 = vmul.f32 %v2340_v37, %v2261_v25  ;;  %v3510_v61 = vld [vmem:[%s4268_s25 + $0x20] sm:$0xff]   ;;  %v3511_v62 = vld [vmem:[%s4268_s25 + $0x58] sm:$0xff]   ;;  %v3513_v37 = vld [vmem:[%s4268_s25 + $0x50] sm:$0xff]  }
 0xaf5   : > { %v3512_v12 = vld [vmem:[%s4268_s25 + $0x18] sm:$0xff]  }
 0xaf6   : > { %3629 = vtanh.f32 %v2362_v0  ;;  %v2363_v31 = vmul.f32 0.7978846, %v2355_v29  ;;  %v2356_v33 = vadd.f32 %v2348_v30, %v2261_v25  ;;  %v3503_v25 = vld [vmem:[%s4268_s25 + $0x78] sm:$0xff]   ;;  %v3514_v0 = vld [vmem:[%s4268_s25 + $0x10] sm:$0xff]   ;;  %v3515_v29 = vld [vmem:[%s4268_s25 + $0x48] sm:$0xff]  }
 0xaf7   : > { %3127 = vmatprep.subr.bf16.mxu0 %v3503_v25  ;;  %v3516_v30 = vld [vmem:[%s4268_s25 + $0x8] sm:$0xff]  }
 0xaf8   : > { %3631 = vtanh.f32 %v2363_v31  ;;  %v2364_v24 = vmul.f32 0.7978846, %v2356_v33  ;;  %v3517_v31 = vld [vmem:[%s4268_s25 + $0x40] sm:$0xff]  }
 0xaf9   : > { %v3518_v33 = vld [vmem:[%s4268_s25] sm:$0xff]  }
 0xafa   : > { %3633 = vtanh.f32 %v2364_v24 }
 0xb01   : > { %v3628_v63 = vpop.eup %3627 }
 0xb02   : > { %v2377_v42 = vadd.f32 1.0, %v3628_v63 }
 0xb03   : > { %v3630_v53 = vpop.eup %3629 }
 0xb04   : > { %v2385_v6 = vmul.f32 %v2377_v42, %v2321_v5  ;;  %v2378_v45 = vadd.f32 1.0, %v3630_v53 }
 0xb05   : > { %v3632_v11 = vpop.eup %3631 }
 0xb06   : > { %v2386_v17 = vmul.f32 %v2378_v45, %v2322_v21  ;;  %v2379_v22 = vadd.f32 1.0, %v3632_v11  ;;  %v2393_v23 = vmul.f32 %v2385_v6, %v2308_v35 }
 0xb07   : > { %v3634_v44 = vpop.eup %3633 }
 0xb08   : > { %v2394_v27 = vmul.f32 %v2386_v17, %v2310_v8  ;;  %v2387_v26 = vmul.f32 %v2379_v22, %v2323_v2  ;;  %v2380_v14 = vadd.f32 1.0, %v3634_v44 }
 0xb0a   : > { %v2388_v18 = vmul.f32 %v2380_v14, %v2324_v20  ;;  %v2404_v52 = vadd.f32 %v2394_v27, %v2393_v23  ;;  %v2395_v43 = vmul.f32 %v2387_v26, %v2312_v34 }
 0xb0c   : > { %v2396_v3 = vmul.f32 %v2388_v18, %v2314_v36  ;;  %2405 = vadd.xlane.f32.xlu1 %v2404_v52  ;;  %v2397_v18 = vld [vmem:[%s4266_s30] sm:$0x3] }
 0xb0e   : > { %v2407_v13 = vadd.f32 %v2396_v3, %v2395_v43 }
 0xb10   : > { %2408 = vadd.xlane.f32.xlu0 %v2407_v13 }
 0xb12   : > { %v2400_v10 = vpop.xlane.xlu1 %2399 }
 0xb13   : > { %v2411_v15 = vmul.f32 0.00390625, %v2400_v10 }
 0xb15   : > { %v4808_v46 = vsub.f32 %v4795_v50, %v2411_v15  ;;  %v4811_v54 = vsub.f32 %v4797_v38, %v2411_v15 }
 0xb16   : > { %v2403_v55 = vpop.xlane.xlu0 %2402 }
 0xb17   : > { %v2412_v51 = vmul.f32 0.00390625, %v2403_v55  ;;  %v2423_v4 = vmul.f32 %v4808_v46, %v4808_v46  ;;  %v2424_v47 = vmul.f32 %v4811_v54, %v4811_v54 }
 0xb19   : > { %v4818_v56 = vsub.f32 %v4801_v1, %v2412_v51  ;;  %v4821_v50 = vsub.f32 %v4803_v28, %v2412_v51  ;;  %v2431_v38 = vadd.f32 %v2424_v47, %v2423_v4  ;;  %v3504_v1 = vld [vmem:[%s4268_s25 + $0x38] sm:$0xff]   ;;  %v3505_v28 = vld [vmem:[%s4268_s25 + $0x70] sm:$0xff]  }
 0xb1a   : > { %3128 = vmatpush3.bf16.msra.mxu0 %v3504_v1 }
 0xb1b   : > { %2432 = vadd.xlane.f32.xlu1 %v2431_v38  ;;  %v2425_v57 = vmul.f32 %v4818_v56, %v4818_v56  ;;  %v2426_v58 = vmul.f32 %v4821_v50, %v4821_v50  ;;  %3129 = vmatprep.subr.bf16.mxu0 %v3505_v28 }
 0xb1d   : > { %v2434_v60 = vadd.f32 %v2426_v58, %v2425_v57 }
 0xb1e   : > { %3130 = vmatpush3.bf16.msra.mxu0 %v3506_v48 }
 0xb1f   : > { %2435 = vadd.xlane.f32.xlu0 %v2434_v60  ;;  %3131 = vmatprep.subr.bf16.mxu0 %v3507_v19 }
 0xb22   : > { %3132 = vmatpush3.bf16.msra.mxu0 %v3508_v32 }
 0xb23   : > { %3133 = vmatprep.subr.bf16.mxu0 %v3509_v7 }
 0xb26   : > { %3134 = vmatpush3.bf16.msra.mxu0 %v3510_v61 }
 0xb27   : > { %3135 = vmatprep.subr.bf16.mxu0 %v3511_v62 }
 0xb2a   : > { %3136 = vmatpush3.bf16.msra.mxu0 %v3512_v12 }
 0xb2b   : > { %3137 = vmatprep.subr.bf16.mxu0 %v3513_v37 }
 0xb2e   : > { %3138 = vmatpush3.bf16.msra.mxu0 %v3514_v0 }
 0xb2f   : > { %3139 = vmatprep.subr.bf16.mxu0 %v3515_v29 }
 0xb32   : > { %3140 = vmatpush3.bf16.msra.mxu0 %v3516_v30 }
 0xb33   : > { %3141 = vmatprep.subr.bf16.mxu0 %v3517_v31 }
 0xb36   : > { %3142 = vmatpush3.bf16.msra.mxu0 %v3518_v33 }
 0xb95   : > { %v2406_v24 = vpop.xlane.xlu1 %2405 }
 0xb96   : > { %v2413_v35 = vmul.f32 0.00390625, %v2406_v24 }
 0xb98   : > { %v2419_v63 = vsub.f32 %v2393_v23, %v2413_v35  ;;  %v2420_v5 = vsub.f32 %v2394_v27, %v2413_v35 }
 0xb99   : > { %v2409_v42 = vpop.xlane.xlu0 %2408 }
 0xb9a   : > { %v2414_v53 = vmul.f32 0.00390625, %v2409_v42  ;;  %v2427_v8 = vmul.f32 %v2419_v63, %v2419_v63  ;;  %v2428_v6 = vmul.f32 %v2420_v5, %v2420_v5 }
 0xb9c   : > { %v2421_v21 = vsub.f32 %v2395_v43, %v2414_v53  ;;  %v2422_v45 = vsub.f32 %v2396_v3, %v2414_v53  ;;  %v2437_v11 = vadd.f32 %v2428_v6, %v2427_v8  ;;  %v2467_v43 = vrot.slane %v2397_v18, %v4295_v41 }
 0xb9d   : > { %v2471_v3 = vrot.slane %v2397_v18, %v2011_v59 }
 0xb9e   : > { %2438 = vadd.xlane.f32.xlu1 %v2437_v11  ;;  %v2429_v17 = vmul.f32 %v2421_v21, %v2421_v21  ;;  %v2430_v2 = vmul.f32 %v2422_v45, %v2422_v45 }
 0xba0   : > { %v2440_v22 = vadd.f32 %v2430_v2, %v2429_v17 }
 0xba2   : > { %2441 = vadd.xlane.f32.xlu0 %v2440_v22 }
 0xba4   : > { %v2433_v44 = vpop.xlane.xlu1 %2432 }
 0xba5   : > { %v2443_v34 = vmul.f32 0.00390625, %v2433_v44 }
 0xba7   : > { %v2447_v20 = vadd.f32 1e-05, %v2443_v34 }
 0xba8   : > { %v2436_v26 = vpop.xlane.xlu0 %2435 }
 0xba9   : > { %3635 = vrsqrt.f32 %v2447_v20  ;;  %v2444_v23 = vmul.f32 0.00390625, %v2436_v26 }
 0xbab   : > { %v2448_v27 = vadd.f32 1e-05, %v2444_v23 }
 0xbad   : > { %3637 = vrsqrt.f32 %v2448_v27 }
 0xbb6   : > { %v3636_v14 = vpop.eup %3635 }
 0xbb7   : > { %v2455_v52 = vmul.f32 %v3636_v14, %v4808_v46  ;;  %v2456_v36 = vmul.f32 %v3636_v14, %v4811_v54 }
 0xbb9   : > { %v2475_v55 = vmul.f32 %v2471_v3, %v2456_v36  ;;  %v2474_v4 = vmul.f32 %v2467_v43, %v2455_v52 }
 0xbba   : > { %v3638_v13 = vpop.eup %3637 }
 0xbbb   : > { %v2457_v10 = vmul.f32 %v3638_v13, %v4818_v56  ;;  %v2458_v15 = vmul.f32 %v3638_v13, %v4821_v50 }
 0xbbd   : > { %v2477_v51 = vmul.f32 %v2471_v3, %v2458_v15  ;;  %v2476_v47 = vmul.f32 %v2467_v43, %v2457_v10 }
 0xbbf   : > { %v2483_v38 = vpack.c.bf16 %v2477_v51, %v2475_v55  ;;  %v2482_v57 = vpack.c.bf16 %v2476_v47, %v2474_v4 }
 0xbc1   : > { %2646 = vmatprep.mubr.bf16.mxu0 %v2483_v38 }
 0xbc2   : > { %2647 = vmatmul.mubr.bf16.vlgmr.msra.gmra.mxu0 %v2482_v57 }
 0xc27   : > { %v2439_v46 = vpop.xlane.xlu1 %2438 }
 0xc28   : > { %v2445_v54 = vmul.f32 0.00390625, %v2439_v46 }
 0xc2a   : > { %v2449_v58 = vadd.f32 1e-05, %v2445_v54 }
 0xc2b   : > { %v2442_v41 = vpop.xlane.xlu0 %2441 }
 0xc2c   : > { %3639 = vrsqrt.f32 %v2449_v58  ;;  %v2446_v40 = vmul.f32 0.00390625, %v2442_v41 }
 0xc2e   : > { %v2450_v59 = vadd.f32 1e-05, %v2446_v40 }
 0xc30   : > { %3641 = vrsqrt.f32 %v2450_v59 }
 0xc39   : > { %v3640_v60 = vpop.eup %3639 }
 0xc3a   : > { %v2460_v56 = vmul.f32 %v3640_v60, %v2420_v5  ;;  %v2459_v25 = vmul.f32 %v3640_v60, %v2419_v63 }
 0xc3c   : > { %v2479_v48 = vmul.f32 %v2471_v3, %v2460_v56  ;;  %v2478_v32 = vmul.f32 %v2467_v43, %v2459_v25 }
 0xc3d   : > { %v3642_v50 = vpop.eup %3641 }
 0xc3e   : > { %v2462_v1 = vmul.f32 %v3642_v50, %v2422_v45  ;;  %v2461_v28 = vmul.f32 %v3642_v50, %v2421_v21 }
 0xc40   : > { %v2481_v19 = vmul.f32 %v2471_v3, %v2462_v1  ;;  %v2480_v7 = vmul.f32 %v2467_v43, %v2461_v28 }
 0xc42   : > { %v2485_v61 = vpack.c.bf16 %v2481_v19, %v2479_v48  ;;  %v2484_v62 = vpack.c.bf16 %v2480_v7, %v2478_v32 }
 0xc44   : > { %2654 = vmatprep.mubr.bf16.mxu0 %v2485_v61 }
 0xc45   : > { %2655 = vmatmul.mubr.bf16.gmra.mxu0 %v2484_v62 }
 0xc82   : > { %v3143_v12 = vpop.f32.mrf.mxu0 }
 0xc84   : > { %v3144_v37 = vpop.f32.mrf.mxu0 }
 0xc85   : > { %v3145_v0 = vadd.f32 %v3144_v37, %v3143_v12 }
 0xc86   : > { %v3146_v29 = vpop.f32.mrf.mxu0 }
 0xc87   : > { %v2649_v30 = vadd.f32 %v3145_v0, %v4731_v39 }
 0xc88   : > { %v3147_v31 = vpop.f32.mrf.mxu0 }
 0xc89   : > { %2663 = vst [vmem:[#allocation2 + $0x10] sm:$0xff] %v2649_v30  ;;  %v3148_v33 = vadd.f32 %v3147_v31, %v3146_v29 }
 0xc8b   : > { %v2652_v24 = vadd.f32 %v3148_v33, %v4734_v9 }
 0xc8d   : > { %2664 = vst [vmem:[#allocation2] sm:$0xff] %v2652_v24 }
 0xd05   : > { %v3149_v35 = vpop.f32.mrf.mxu0 }
 0xd07   : > { %v3150_v63 = vpop.f32.mrf.mxu0 }
 0xd08   : > { %v3151_v5 = vadd.f32 %v3150_v63, %v3149_v35 }
 0xd09   : > { %v3152_v42 = vpop.f32.mrf.mxu0 }
 0xd0a   : > { %v2657_v53 = vadd.f32 %v3151_v5, %v4737_v49 }
 0xd0b   : > { %v3153_v8 = vpop.f32.mrf.mxu0 }
 0xd0c   : > { %2665 = vst [vmem:[#allocation2 + $0x18] sm:$0xff] %v2657_v53  ;;  %v3154_v6 = vadd.f32 %v3153_v8, %v3152_v42  ;;  %2670 = sbr.rel (%p3073_p7) target bundleno = 3658 (0xe4a), region = 96 }
 0xd0e   : > { %v2660_v21 = vadd.f32 %v3154_v6, %v4740_v16 }
 0xd10   : > { %2666 = vst [vmem:[#allocation2 + $0x8] sm:$0xff] %v2660_v21 }
 0xd11   : > { %2672 = vadd.xlane.f32.xlu0 %v2649_v30  ;;  %2676 = vadd.xlane.f32.xlu1 %v2657_v53  ;;  %v3074_v57 = vld [vmem:[%s4932_s17] ss:$0 sm:$0xff] }
 0xd15   : > { %2674 = vadd.xlane.f32.xlu0 %v2652_v24  ;;  %2678 = vadd.xlane.f32.xlu1 %v2660_v21 }
 0xd9a   : > { %v2673_v39 = vpop.xlane.xlu0 %2672  ;;  %v2677_v9 = vpop.xlane.xlu1 %2676 }
 0xd9b   : > { %v2680_v45 = vmul.f32 0.0078125, %v2673_v39  ;;  %v2682_v11 = vmul.f32 0.0078125, %v2677_v9 }
 0xd9d   : > { %v2684_v17 = vsub.f32 %v2649_v30, %v2680_v45  ;;  %v2686_v2 = vsub.f32 %v2657_v53, %v2682_v11 }
 0xd9e   : > { %v2675_v49 = vpop.xlane.xlu0 %2674  ;;  %v2679_v22 = vpop.xlane.xlu1 %2678 }
 0xd9f   : > { %v2681_v44 = vmul.f32 0.0078125, %v2675_v49  ;;  %v2688_v34 = vmul.f32 %v2684_v17, %v2684_v17  ;;  %v2683_v20 = vmul.f32 0.0078125, %v2679_v22  ;;  %v2690_v23 = vmul.f32 %v2686_v2, %v2686_v2 }
 0xda1   : > { %v2685_v16 = vsub.f32 %v2652_v24, %v2681_v44  ;;  %2692 = vadd.xlane.f32.xlu0 %v2688_v34  ;;  %v2687_v26 = vsub.f32 %v2660_v21, %v2683_v20 }
 0xda3   : > { %v2689_v27 = vmul.f32 %v2685_v16, %v2685_v16  ;;  %v2691_v14 = vmul.f32 %v2687_v26, %v2687_v26 }
 0xda5   : > { %2696 = vadd.xlane.f32.xlu0 %v2690_v23  ;;  %2694 = vadd.xlane.f32.xlu1 %v2689_v27 }
 0xda9   : > { %2698 = vadd.xlane.f32.xlu1 %v2691_v14 }
 0xe2a   : > { %v2693_v18 = vpop.xlane.xlu0 %2692 }
 0xe2b   : > { %v2700_v52 = vmul.f32 0.0078125, %v2693_v18 }
 0xe2d   : > { %v2704_v36 = vadd.f32 1e-05, %v2700_v52 }
 0xe2e   : > { %v2695_v43 = vpop.xlane.xlu1 %2694  ;;  %v2697_v3 = vpop.xlane.xlu0 %2696 }
 0xe2f   : > { %3648 = vrsqrt.f32 %v2704_v36  ;;  %v2701_v13 = vmul.f32 0.0078125, %v2695_v43  ;;  %v2702_v10 = vmul.f32 0.0078125, %v2697_v3 }
 0xe31   : > { %v2705_v15 = vadd.f32 1e-05, %v2701_v13  ;;  %v2706_v55 = vadd.f32 1e-05, %v2702_v10 }
 0xe32   : > { %v2699_v51 = vpop.xlane.xlu1 %2698 }
 0xe33   : > { %3650 = vrsqrt.f32 %v2705_v15  ;;  %v2703_v4 = vmul.f32 0.0078125, %v2699_v51 }
 0xe34   : > { %3652 = vrsqrt.f32 %v2706_v55 }
 0xe35   : > { %v2707_v47 = vadd.f32 1e-05, %v2703_v4 }
 0xe37   : > { %3654 = vrsqrt.f32 %v2707_v47 }
 0xe3c   : > { %v3649_v38 = vpop.eup %3648 }
 0xe3d   : > { %v2712_v46 = vmul.f32 %v3649_v38, %v2684_v17 }
 0xe3f   : > { %v2722_v54 = vmul.f32 %v3074_v57, %v2712_v46 }
 0xe40   : > { %v3651_v58 = vpop.eup %3650 }
 0xe41   : > { %v3653_v41 = vpop.eup %3652  ;;  %2726 = vst [vmem:[#allocation17] sm:$0xff] %v2722_v54  ;;  %v2713_v40 = vmul.f32 %v3651_v58, %v2685_v16 }
 0xe42   : > { %v2714_v59 = vmul.f32 %v3653_v41, %v2686_v2 }
 0xe43   : > { %v2723_v60 = vmul.f32 %v3074_v57, %v2713_v40 }
 0xe44   : > { %v3655_v56 = vpop.eup %3654  ;;  %v2724_v25 = vmul.f32 %v3074_v57, %v2714_v59 }
 0xe45   : > { %2727 = vst [vmem:[#allocation17 + $0x8] sm:$0xff] %v2723_v60  ;;  %v2715_v50 = vmul.f32 %v3655_v56, %v2687_v26 }
 0xe46   : > { %2728 = vst [vmem:[#allocation17 + $0x10] sm:$0xff] %v2724_v25 }
 0xe47   : > { %v2725_v1 = vmul.f32 %v3074_v57, %v2715_v50 }
 0xe49   : > { %2729 = vst [vmem:[#allocation17 + $0x18] sm:$0xff] %v2725_v1 }
 0xe4a PF: > { %p3320_p4 = scmp.eq.s32.totalorder %s4152_s3, 1  ;;  %s3995_s23 = smov [#allocation17]  }
 0xe4b   : > { %s2740_s26 = sshll.u32 %s3995_s23, 4  ;;  %s2741_s26 = int_to_ptr.vmem [resolvable:$true] %s2740_s26 }
 0xe4c   : > { %s3878_s15 = scalar_lea.vmem %s2741_s26, 512  ;;  %p3885_p1 = scmp.lt.s32.totalorder %s2741_s26, %s2741_s26 }
 0xe4d   : > { %p3879_p9 = scmp.ne.s32.totalorder %s2741_s26, %s3878_s15  ;;  %p3886_p2 = scmp.lt.s32.totalorder %s3878_s15, %s3878_s15 }
 0xe4f   : > { %p3880_p10 = pnand %p3879_p9, %p3320_p4  ;;  %p3887_p3 = por %p3886_p2, %p3885_p1 }
 0xe51   : > { %p3881_p0 = pneg %p3880_p10 }
 0xe53   : > { %p3888_p5 = pnand %p3887_p3, %p3881_p0 }
 0xe55   : > { %3891 = shalt.err (!%p3888_p5)
}
 0xe56   : > { %s3996_s29 = smov 128   ;;  %s3997_s12 = smov 8  }
 0xe57   : > { %s4933_s8 = sld [smem:[#allocation33_spill]] }
 0xe5d   : > { %3288 = dma.vmem_to_hbm [thread:$0]  (%p3320_p4), %s2741_s26, 512, %s4933_s8, [#allocation5], %s3996_s29, %s3996_s29, %s3997_s12  }
 0xe5e   : > { %3947 = dma.done.wait (%p3320_p4), [#allocation5], 512  }
 0xe5f   : > { %3949 = vsyncadd (%p3320_p4), [#allocation5], 4294966784 }
 0xe60 PF: > { %s33_s14 = sadd.s32 1, %s3972_s14   ;;  %s4934_s9 = sld [smem:[#allocation24_spill]] }
 0xe61   : > { %p30_p8 = scmp.ge.s32.totalorder %s33_s14, 4   ;;  %s4935_s11 = sld [smem:[#allocation27_spill]] }
 0xe62   : > { %s4936_s28 = sld [smem:[#allocation26_spill]]  ;;  %s4937_s30 = smov %s3956_s10 }
 0xe63   : > { %s4939_s12 = smov %s3968_s13 }
 0xe64   :  { %32 = sbr.rel (!%p30_p8) target bundleno = 19 (0x13), region = 180 }
 0xe66   : > { %s4938_s10 = smov %s4934_s9 }
 0xe68   : > { %s4940_s13 = smov %s4936_s28 }
 0xe69   :  { %2756 = vsyncpa [#allocation4], 1 }
 0xe6a   :  { %2758 = vsyncpa [#allocation4 + $0x1], 1 }
 0xe6b   :  { %2759 = vsyncpa [#allocation7], 1 }
 0xe6c   :  { %2761 = vsyncpa [#allocation7 + $0x1], 1 }
 0xe6d   :  { %2762 = vsyncpa [#allocation10], 1 }
 0xe6e   :  { %2764 = vsyncpa [#allocation10 + $0x1], 1 }
 0xe6f   :  { %2765 = vsyncpa [#allocation13], 1 }
 0xe70   :  { %2767 = vsyncpa [#allocation13 + $0x1], 1 }
 0xe71   :  { %2768 = vsyncpa [#allocation16], 1 }
 0xe72   :  { %2770 = vsyncpa [#allocation16 + $0x1], 1 }
 0xe73   :  { %2771 = vsyncpa [#allocation5], 1 }
 0xe74   :  { %2773 = vsyncpa [#allocation5 + $0x1], 1 }

</bundles_post_ra>
